<compile_context>
chip_gen: v6e
topology: v6e:2x2x1
jax: 0.10.0
libtpu: 0.0.40
codegen_flags: <defaults>
</compile_context>

<pallas_src>
import functools
import math

import jax
import jax.numpy as jnp
from jax import lax
from jax.experimental import pallas as pl
from jax.experimental.pallas import tpu as pltpu


def _layernorm(x, gamma, beta, eps=1e-5):
    # x: (M, E) f32, gamma/beta: (1, E) f32
    mu = jnp.mean(x, axis=-1, keepdims=True)
    var = jnp.mean((x - mu) ** 2, axis=-1, keepdims=True)
    return (x - mu) * lax.rsqrt(var + eps) * gamma + beta


def _gelu(x, approx):
    if approx:
        # tanh-approx GELU: transcendentals run on the EUP slot and overlap
        # with MXU/VALU work.  Not bit-identical to nn.GELU()'s exact erf.
        return jax.nn.gelu(x, approximate=True)
    # nn.GELU() default: exact erf-based GELU.
    return 0.5 * x * (1.0 + lax.erf(x * (1.0 / math.sqrt(2.0))))


def encoder_kernel(x_ref, gamma_ref, beta_ref, wqkv_ref, bqkv_ref,
                   w1_ref, b1_ref, w2_ref, b2_ref, out_ref,
                   qkv_ref, msa_ref, *, heads, head_dim, t_real, t_pad,
                   block_b, matmul_dtype, gelu_approx):
    Bb, Tp = block_b, t_pad
    hd = head_dim
    E = heads * hd
    M = Bb * Tp
    mdt = matmul_dtype

    gamma = gamma_ref[...]                      # (1, E)
    beta = beta_ref[...]

    # ---- LayerNorm(x) + fused QKV projection --------------------------------
    # The weight is the host-built block-diagonal [Wq | Wk | Wv] so one
    # (M,E)x(E,3E) matmul produces every head's q,k,v lane-dense.  The result is
    # spilled deliberately (cast once to matmul_dtype after the bias add) into a
    # VMEM scratch ref; the attention loop then only issues targeted vlds for
    # small per-head slices instead of holding a (M,3E) f32 value live.
    ln1 = _layernorm(x_ref[...].reshape(M, E), gamma, beta)
    qkv_ref[...] = (
        jnp.dot(ln1.astype(mdt), wqkv_ref[...],
                preferred_element_type=jnp.float32) + bqkv_ref[...]
    ).astype(mdt).reshape(Bb, Tp, 3 * E)

    scale = 1.0 / math.sqrt(float(hd))
    if Tp > t_real:
        # Additive key bias: 0 for real keys, -1e30 for padded keys.  One
        # (1, Tp) row shared by all heads instead of a (Tp, Tp) select each.
        key_bias = jnp.where(
            lax.broadcasted_iota(jnp.int32, (1, Tp), 1) < t_real,
            jnp.float32(0.0), jnp.float32(-1e30))
    else:
        key_bias = None

    # ---- per-head attention --------------------------------------------------
    # fori_loop over batch rows bounds the live range of the (Tp, Tp) score /
    # probability tiles to one row; the head loop is a small static unroll.
    def batch_body(b, carry):
        for h in range(heads):
            c0 = h * hd
            q = qkv_ref[b, :, c0:c0 + hd]                        # (Tp, hd) mdt
            k = qkv_ref[b, :, E + c0:E + c0 + hd]                # (Tp, hd) mdt
            v = qkv_ref[b, :, 2 * E + c0:2 * E + c0 + hd]        # (Tp, hd) mdt
            # q @ k^T without materializing a transposed k.
            s = lax.dot_general(q, k,
                                dimension_numbers=(((1,), (1,)), ((), ())),
                                preferred_element_type=jnp.float32) * scale
            if key_bias is not None:
                s = s + key_bias
            s = s - jnp.max(s, axis=-1, keepdims=True)
            p = jnp.exp(s)
            p = p * pl.reciprocal(jnp.sum(p, axis=-1, keepdims=True), approx=True)
            att = jnp.dot(p.astype(mdt), v, preferred_element_type=jnp.float32)
            msa_ref[b, :, c0:c0 + hd] = att
        return carry

    lax.fori_loop(0, Bb, batch_body, 0)

    # ---- residual 1 (dropout p=0 -> identity).  Re-read x from its ref so the
    # residual does not pin ~M*E f32 of vregs across the attention loop. -------
    int_x = msa_ref[...].reshape(M, E) + x_ref[...].reshape(M, E)

    # ---- LayerNorm(int_x) with the SAME gamma/beta (shared nn.LayerNorm) ----
    ln2 = _layernorm(int_x, gamma, beta)

    # ---- MLP: Linear -> GELU -> Linear (weights pre-transposed on host) -----
    h1 = jnp.dot(ln2.astype(mdt), w1_ref[...],
                 preferred_element_type=jnp.float32) + b1_ref[...]       # (M, H)
    h1 = _gelu(h1, gelu_approx)
    mlp = jnp.dot(h1.astype(mdt), w2_ref[...],
                  preferred_element_type=jnp.float32) + b2_ref[...]      # (M, E)

    # ---- residual 2 ----------------------------------------------------------
    out_ref[...] = (mlp + int_x).reshape(Bb, Tp, E).astype(out_ref.dtype)


def transformer_encoder(x, params, *, heads, block_b=None, seq_align=None,
                        matmul_dtype=jnp.bfloat16, gelu_approx=False):
    """x: (B, T, E) float32. params: dict from init_params."""
    B, T, E = x.shape
    assert E % heads == 0
    hd = E // heads
    H = params["w1"].shape[0]

    # --- pad tokens only to the sublane multiple (8) when T is small; keep
    # 128-lane alignment only when T is already >= one lane tile. -------------
    if seq_align is None:
        seq_align = 128 if T >= 128 else 8
    T_pad = ((T + seq_align - 1) // seq_align) * seq_align
    x_p = jnp.pad(x, ((0, 0), (0, T_pad - T), (0, 0))) if T_pad != T else x

    # --- batch rows folded into the matmul M dimension per grid step.  Default
    # keeps >= 2 "parallel" steps (v7x has 2 TensorCores); on single-TC
    # v5e/v6e pass block_b=B to collapse to a single grid step. ---------------
    if block_b is None:
        block_b = B // 2 if (B >= 2 and B % 2 == 0) else 1
    assert B % block_b == 0

    # --- host-side weight prep: pre-transpose + fused block-diagonal QKV -----
    gamma = params["gamma"].reshape(1, E).astype(jnp.float32)
    beta = params["beta"].reshape(1, E).astype(jnp.float32)

    wqkv_t = params["wqkv"].T                       # (hd, 3hd) = [Wq^T | Wk^T | Wv^T]
    eye = jnp.eye(heads, dtype=jnp.float32)
    # block-diag per head, q/k/v packed along the lane dim -> (E, 3E)
    w_blk = jnp.concatenate(
        [jnp.kron(eye, wqkv_t[:, i * hd:(i + 1) * hd]) for i in range(3)], axis=1)
    bqkv = params["bqkv"]
    b_blk = jnp.concatenate(
        [jnp.tile(bqkv[i * hd:(i + 1) * hd], heads) for i in range(3)]
    ).reshape(1, 3 * E).astype(jnp.float32)

    w1_t = params["w1"].T                           # (E, H)
    w2_t = params["w2"].T                           # (H, E)
    b1 = params["b1"].reshape(1, H).astype(jnp.float32)
    b2 = params["b2"].reshape(1, E).astype(jnp.float32)

    # MXU operands in bf16 (or f32 for exact parity); biases stay f32.
    w_blk = w_blk.astype(matmul_dtype)
    w1_t = w1_t.astype(matmul_dtype)
    w2_t = w2_t.astype(matmul_dtype)

    kernel = functools.partial(
        encoder_kernel, heads=heads, head_dim=hd, t_real=T, t_pad=T_pad,
        block_b=block_b, matmul_dtype=matmul_dtype, gelu_approx=gelu_approx)

    const2 = lambda b: (0, 0)

    out_p = pl.pallas_call(
        kernel,
        out_shape=jax.ShapeDtypeStruct((B, T_pad, E), x.dtype),
        grid_spec=pltpu.PrefetchScalarGridSpec(
            num_scalar_prefetch=0,
            grid=(B // block_b,),
            in_specs=[
                pl.BlockSpec((block_b, T_pad, E), lambda b: (b, 0, 0)),  # x
                pl.BlockSpec((1, E), const2),            # gamma
                pl.BlockSpec((1, E), const2),            # beta
                pl.BlockSpec((E, 3 * E), const2),        # fused qkv weight (E, 3E)
                pl.BlockSpec((1, 3 * E), const2),        # fused qkv bias
                pl.BlockSpec((E, H), const2),            # w1^T
                pl.BlockSpec((1, H), const2),            # b1
                pl.BlockSpec((H, E), const2),            # w2^T
                pl.BlockSpec((1, E), const2),            # b2
            ],
            out_specs=pl.BlockSpec((block_b, T_pad, E), lambda b: (b, 0, 0)),
            scratch_shapes=[
                pltpu.VMEM((block_b, T_pad, 3 * E), matmul_dtype),   # qkv slab
                pltpu.VMEM((block_b, T_pad, E), jnp.float32),        # MSA slab
            ],
        ),
        compiler_params=pltpu.CompilerParams(
            dimension_semantics=("parallel",),
            vmem_limit_bytes=32 * 1024 * 1024),
    )(x_p, gamma, beta, w_blk, b_blk, w1_t, b1, w2_t, b2)

    return out_p[:, :T, :] if T_pad != T else out_p


def init_params(key, embed_dim, heads, mlp_hidden_dim):
    hd = embed_dim // heads
    ks = jax.random.split(key, 3)

    def uniform_linear(k, out_f, in_f):
        # Mimic nn.Linear default init: U(-1/sqrt(in_f), 1/sqrt(in_f))
        bound = 1.0 / math.sqrt(in_f)
        kw, kb = jax.random.split(k)
        w = jax.random.uniform(kw, (out_f, in_f), jnp.float32, -bound, bound)
        b = jax.random.uniform(kb, (out_f,), jnp.float32, -bound, bound)
        return w, b

    wqkv, bqkv = uniform_linear(ks[0], 3 * hd, hd)
    w1, b1 = uniform_linear(ks[1], mlp_hidden_dim, embed_dim)
    w2, b2 = uniform_linear(ks[2], embed_dim, mlp_hidden_dim)
    return {
        "gamma": jnp.ones((embed_dim,), jnp.float32),   # LayerNorm default init
        "beta": jnp.zeros((embed_dim,), jnp.float32),
        "wqkv": wqkv, "bqkv": bqkv,
        "w1": w1, "b1": b1,
        "w2": w2, "b2": b2,
    }


def reference_forward(x, params, *, heads):
    """Pure-JAX f32 reference matching the PyTorch forward (eval mode)."""
    B, T, E = x.shape
    hd = E // heads
    gamma, beta = params["gamma"], params["beta"]

    def ln(v):
        mu = jnp.mean(v, axis=-1, keepdims=True)
        var = jnp.mean((v - mu) ** 2, axis=-1, keepdims=True)
        return (v - mu) / jnp.sqrt(var + 1e-5) * gamma + beta

    ln1 = ln(x)
    xh = ln1.reshape(B, T, heads, hd).transpose(0, 2, 1, 3)      # (B, h, T, hd)
    qkv = jnp.einsum("bhtd,ed->bhte", xh, params["wqkv"]) + params["bqkv"]
    q, k, v = qkv[..., :hd], qkv[..., hd:2 * hd], qkv[..., 2 * hd:]
    s = jnp.einsum("bhqd,bhkd->bhqk", q, k) / math.sqrt(hd)
    p = jax.nn.softmax(s, axis=-1)
    att = jnp.einsum("bhqk,bhkd->bhqd", p, v)
    msa = att.transpose(0, 2, 1, 3).reshape(B, T, E)

    int_x = msa + x
    ln2 = ln(int_x)
    h1 = jax.nn.gelu(jnp.einsum("bte,he->bth", ln2, params["w1"]) + params["b1"],
                     approximate=False)
    mlp = jnp.einsum("bth,eh->bte", h1, params["w2"]) + params["b2"]
    return mlp + int_x


if __name__ == "__main__":
    # Module defaults: heads=8, embed_dim=128, mlp_hidden_dim=256.
    B, T, E = 2, 8, 128
    heads, mlp_hidden = 8, 256

    key = jax.random.PRNGKey(0)
    kx, kp = jax.random.split(key)
    x = jax.random.normal(kx, (B, T, E), dtype=jnp.float32)
    params = init_params(kp, E, heads, mlp_hidden)

    ref = jax.block_until_ready(reference_forward(x, params, heads=heads))

    # f32 MXU-operand path: tight parity with the PyTorch/JAX reference.
    out_f32 = jax.block_until_ready(
        transformer_encoder(x, params, heads=heads, matmul_dtype=jnp.float32))
    assert out_f32.shape == (B, T, E)
    err32 = float(jnp.max(jnp.abs(out_f32 - ref)))
    assert jnp.allclose(out_f32, ref, atol=3e-3, rtol=3e-3), \
        f"f32 max abs err = {err32}"

    # bf16 MXU-operand path (f32 accumulation): default, looser tolerance.
    out_bf16 = jax.block_until_ready(
        transformer_encoder(x, params, heads=heads, matmul_dtype=jnp.bfloat16))
    err16 = float(jnp.max(jnp.abs(out_bf16 - ref)))
    assert jnp.allclose(out_bf16, ref, atol=6e-2, rtol=6e-2), \
        f"bf16 max abs err = {err16}"

    # Non-multiple-of-8 token count exercises the additive key-bias mask path.
    T2 = 6
    x2 = x[:, :T2, :]
    ref2 = jax.block_until_ready(reference_forward(x2, params, heads=heads))
    out2 = jax.block_until_ready(
        transformer_encoder(x2, params, heads=heads, matmul_dtype=jnp.float32))
    assert out2.shape == (B, T2, E)
    err2 = float(jnp.max(jnp.abs(out2 - ref2)))
    assert jnp.allclose(out2, ref2, atol=3e-3, rtol=3e-3), \
        f"masked-path max abs err = {err2}"

    # tanh-approx GELU path (EUP offload); looser tolerance vs exact-erf ref.
    out_tanh = jax.block_until_ready(
        transformer_encoder(x, params, heads=heads, matmul_dtype=jnp.float32,
                            gelu_approx=True))
    err_t = float(jnp.max(jnp.abs(out_tanh - ref)))
    assert jnp.allclose(out_tanh, ref, atol=3e-2, rtol=3e-2), \
        f"tanh-gelu max abs err = {err_t}"

    print("KERNEL_OK")
</pallas_src>

<mosaic_0001>
module attributes {stable_mosaic.version = 11 : i64} {
  func.func @encoder_kernel(%arg0: i32, %arg1: memref<1x8x128xf32, #tpu.memory_space<vmem>>, %arg2: memref<1x128xf32, #tpu.memory_space<vmem>>, %arg3: memref<1x128xf32, #tpu.memory_space<vmem>>, %arg4: memref<128x384xf32, #tpu.memory_space<vmem>>, %arg5: memref<1x384xf32, #tpu.memory_space<vmem>>, %arg6: memref<128x256xf32, #tpu.memory_space<vmem>>, %arg7: memref<1x256xf32, #tpu.memory_space<vmem>>, %arg8: memref<256x128xf32, #tpu.memory_space<vmem>>, %arg9: memref<1x128xf32, #tpu.memory_space<vmem>>, %arg10: memref<1x8x128xf32, #tpu.memory_space<vmem>>, %arg11: memref<1x8x384xf32, #tpu.memory_space<vmem>>, %arg12: memref<1x8x128xf32, #tpu.memory_space<vmem>>) attributes {dimension_semantics = [#tpu.dimension_semantics<parallel>], iteration_bounds = array<i64: 2>, scalar_prefetch = 0 : i64, scratch_operands = 2 : i64, tpu.core_type = #tpu.core_type<tc>, window_params = [{transform_indices = @transform_0, window_bounds = array<i64: 1, 8, 128>}, {pipeline_mode = #tpu.pipeline_mode<synchronous>, transform_indices = @transform_1, window_bounds = array<i64: 1, 128>}, {pipeline_mode = #tpu.pipeline_mode<synchronous>, transform_indices = @transform_2, window_bounds = array<i64: 1, 128>}, {pipeline_mode = #tpu.pipeline_mode<synchronous>, transform_indices = @transform_3, window_bounds = array<i64: 128, 384>}, {pipeline_mode = #tpu.pipeline_mode<synchronous>, transform_indices = @transform_4, window_bounds = array<i64: 1, 384>}, {pipeline_mode = #tpu.pipeline_mode<synchronous>, transform_indices = @transform_5, window_bounds = array<i64: 128, 256>}, {pipeline_mode = #tpu.pipeline_mode<synchronous>, transform_indices = @transform_6, window_bounds = array<i64: 1, 256>}, {pipeline_mode = #tpu.pipeline_mode<synchronous>, transform_indices = @transform_7, window_bounds = array<i64: 256, 128>}, {pipeline_mode = #tpu.pipeline_mode<synchronous>, transform_indices = @transform_8, window_bounds = array<i64: 1, 128>}, {transform_indices = @transform_9, window_bounds = array<i64: 1, 8, 128>}]} {
    %c0 = arith.constant 0 : index
    %c0_0 = arith.constant 0 : index
    %0 = vector.load %arg2[%c0, %c0_0] : memref<1x128xf32, #tpu.memory_space<vmem>>, vector<1x128xf32>
    %c0_1 = arith.constant 0 : index
    %c0_2 = arith.constant 0 : index
    %1 = vector.load %arg3[%c0_1, %c0_2] : memref<1x128xf32, #tpu.memory_space<vmem>>, vector<1x128xf32>
    %c0_3 = arith.constant 0 : index
    %c0_4 = arith.constant 0 : index
    %c0_5 = arith.constant 0 : index
    %2 = vector.load %arg1[%c0_3, %c0_4, %c0_5] : memref<1x8x128xf32, #tpu.memory_space<vmem>>, vector<1x8x128xf32>
    %3 = vector.shape_cast %2 : vector<1x8x128xf32> to vector<8x128xf32>
    %cst = arith.constant dense<0.000000e+00> : vector<8xf32>
    %4 = vector.multi_reduction <add>, %3, %cst [1] : vector<8x128xf32> to vector<8xf32>
    %5 = vector.shape_cast %4 : vector<8xf32> to vector<8x1xf32>
    %cst_6 = arith.constant 1.280000e+02 : f32
    %6 = vector.broadcast %cst_6 : f32 to vector<8x1xf32>
    %7 = arith.divf %5, %6 : vector<8x1xf32>
    %8 = vector.broadcast %7 : vector<8x1xf32> to vector<8x128xf32>
    %9 = arith.subf %3, %8 : vector<8x128xf32>
    %10 = arith.mulf %9, %9 : vector<8x128xf32>
    %cst_7 = arith.constant dense<0.000000e+00> : vector<8xf32>
    %11 = vector.multi_reduction <add>, %10, %cst_7 [1] : vector<8x128xf32> to vector<8xf32>
    %12 = vector.shape_cast %11 : vector<8xf32> to vector<8x1xf32>
    %cst_8 = arith.constant 1.280000e+02 : f32
    %13 = vector.broadcast %cst_8 : f32 to vector<8x1xf32>
    %14 = arith.divf %12, %13 : vector<8x1xf32>
    %15 = vector.broadcast %7 : vector<8x1xf32> to vector<8x128xf32>
    %16 = arith.subf %3, %15 : vector<8x128xf32>
    %cst_9 = arith.constant 9.99999974E-6 : f32
    %17 = vector.broadcast %cst_9 : f32 to vector<8x1xf32>
    %18 = arith.addf %14, %17 : vector<8x1xf32>
    %19 = math.rsqrt %18 : vector<8x1xf32>
    %20 = vector.broadcast %19 : vector<8x1xf32> to vector<8x128xf32>
    %21 = arith.mulf %16, %20 : vector<8x128xf32>
    %22 = vector.broadcast %0 : vector<1x128xf32> to vector<8x128xf32>
    %23 = arith.mulf %21, %22 : vector<8x128xf32>
    %24 = vector.broadcast %1 : vector<1x128xf32> to vector<8x128xf32>
    %25 = arith.addf %23, %24 : vector<8x128xf32>
    %c0_10 = arith.constant 0 : index
    %c0_11 = arith.constant 0 : index
    %26 = vector.load %arg4[%c0_10, %c0_11] : memref<128x384xf32, #tpu.memory_space<vmem>>, vector<128x384xf32>
    %cst_12 = arith.constant dense<0.000000e+00> : vector<8x384xf32>
    %27 = tpu.matmul %25, %26, %cst_12 {dimension_numbers = #tpu.dot_dimension_numbers<[1], [0], [0], [1], [0, 0, 1, 1], [], []>} : vector<8x128xf32>, vector<128x384xf32>, vector<8x384xf32> -> vector<8x384xf32>
    %c0_13 = arith.constant 0 : index
    %c0_14 = arith.constant 0 : index
    %28 = vector.load %arg5[%c0_13, %c0_14] : memref<1x384xf32, #tpu.memory_space<vmem>>, vector<1x384xf32>
    %29 = vector.broadcast %28 : vector<1x384xf32> to vector<8x384xf32>
    %30 = arith.addf %27, %29 : vector<8x384xf32>
    %31 = vector.shape_cast %30 : vector<8x384xf32> to vector<1x8x384xf32>
    %c0_15 = arith.constant 0 : index
    %c0_16 = arith.constant 0 : index
    %c0_17 = arith.constant 0 : index
    %32 = vector.load %arg11[%c0_15, %c0_16, %c0_17] : memref<1x8x384xf32, #tpu.memory_space<vmem>>, vector<1x8x384xf32>
    tpu.vector_store %arg11[%c0_15, %c0_16, %c0_17], %31 {strides = array<i32>} : memref<1x8x384xf32, #tpu.memory_space<vmem>>, vector<1x8x384xf32>,
    %c0_i32 = arith.constant 0 : i32
    %33 = arith.index_cast %c0_i32 : i32 to index
    %c0_18 = arith.constant 0 : index
    %c0_19 = arith.constant 0 : index
    %34 = vector.load %arg11[%33, %c0_18, %c0_19] : memref<1x8x384xf32, #tpu.memory_space<vmem>>, vector<1x8x16xf32>
    %35 = vector.shape_cast %34 : vector<1x8x16xf32> to vector<8x16xf32>
    %36 = arith.index_cast %c0_i32 : i32 to index
    %c0_20 = arith.constant 0 : index
    %c128 = arith.constant 128 : index
    %37 = vector.load %arg11[%36, %c0_20, %c128] : memref<1x8x384xf32, #tpu.memory_space<vmem>>, vector<1x8x16xf32>
    %38 = vector.shape_cast %37 : vector<1x8x16xf32> to vector<8x16xf32>
    %39 = arith.index_cast %c0_i32 : i32 to index
    %c0_21 = arith.constant 0 : index
    %c256 = arith.constant 256 : index
    %40 = vector.load %arg11[%39, %c0_21, %c256] : memref<1x8x384xf32, #tpu.memory_space<vmem>>, vector<1x8x16xf32>
    %41 = vector.shape_cast %40 : vector<1x8x16xf32> to vector<8x16xf32>
    %cst_22 = arith.constant dense<0.000000e+00> : vector<8x8xf32>
    %42 = tpu.matmul %35, %38, %cst_22 {dimension_numbers = #tpu.dot_dimension_numbers<[1], [1], [0], [0], [0, 0, 1, 0], [], []>} : vector<8x16xf32>, vector<8x16xf32>, vector<8x8xf32> -> vector<8x8xf32>
    %cst_23 = arith.constant 2.500000e-01 : f32
    %43 = vector.broadcast %cst_23 : f32 to vector<8x8xf32>
    %44 = arith.mulf %42, %43 : vector<8x8xf32>
    %cst_24 = arith.constant dense<0xFF800000> : vector<8xf32>
    %45 = vector.multi_reduction <maximumf>, %44, %cst_24 [1] : vector<8x8xf32> to vector<8xf32>
    %46 = vector.shape_cast %45 : vector<8xf32> to vector<8x1xf32>
    %47 = vector.broadcast %46 : vector<8x1xf32> to vector<8x8xf32>
    %48 = arith.subf %44, %47 : vector<8x8xf32>
    %49 = math.exp %48 : vector<8x8xf32>
    %cst_25 = arith.constant dense<0.000000e+00> : vector<8xf32>
    %50 = vector.multi_reduction <add>, %49, %cst_25 [1] : vector<8x8xf32> to vector<8xf32>
    %51 = vector.shape_cast %50 : vector<8xf32> to vector<8x1xf32>
    %52 = tpu.reciprocal %51 {approx = true} : vector<8x1xf32> -> vector<8x1xf32>
    %53 = vector.broadcast %52 : vector<8x1xf32> to vector<8x8xf32>
    %54 = arith.mulf %49, %53 : vector<8x8xf32>
    %cst_26 = arith.constant dense<0.000000e+00> : vector<8x16xf32>
    %55 = tpu.matmul %54, %41, %cst_26 {dimension_numbers = #tpu.dot_dimension_numbers<[1], [0], [0], [1], [0, 0, 1, 1], [], []>} : vector<8x8xf32>, vector<8x16xf32>, vector<8x16xf32> -> vector<8x16xf32>
    %56 = arith.index_cast %c0_i32 : i32 to index
    %c0_27 = arith.constant 0 : index
    %c0_28 = arith.constant 0 : index
    %57 = vector.load %arg12[%56, %c0_27, %c0_28] : memref<1x8x128xf32, #tpu.memory_space<vmem>>, vector<1x8x16xf32>
    %58 = vector.shape_cast %57 : vector<1x8x16xf32> to vector<8x16xf32>
    %59 = vector.shape_cast %55 : vector<8x16xf32> to vector<1x8x16xf32>
    tpu.vector_store %arg12[%56, %c0_27, %c0_28], %59 {strides = array<i32>} : memref<1x8x128xf32, #tpu.memory_space<vmem>>, vector<1x8x16xf32>,
    %60 = arith.index_cast %c0_i32 : i32 to index
    %c0_29 = arith.constant 0 : index
    %c16 = arith.constant 16 : index
    %61 = vector.load %arg11[%60, %c0_29, %c16] : memref<1x8x384xf32, #tpu.memory_space<vmem>>, vector<1x8x16xf32>
    %62 = vector.shape_cast %61 : vector<1x8x16xf32> to vector<8x16xf32>
    %63 = arith.index_cast %c0_i32 : i32 to index
    %c0_30 = arith.constant 0 : index
    %c144 = arith.constant 144 : index
    %64 = vector.load %arg11[%63, %c0_30, %c144] : memref<1x8x384xf32, #tpu.memory_space<vmem>>, vector<1x8x16xf32>
    %65 = vector.shape_cast %64 : vector<1x8x16xf32> to vector<8x16xf32>
    %66 = arith.index_cast %c0_i32 : i32 to index
    %c0_31 = arith.constant 0 : index
    %c272 = arith.constant 272 : index
    %67 = vector.load %arg11[%66, %c0_31, %c272] : memref<1x8x384xf32, #tpu.memory_space<vmem>>, vector<1x8x16xf32>
    %68 = vector.shape_cast %67 : vector<1x8x16xf32> to vector<8x16xf32>
    %cst_32 = arith.constant dense<0.000000e+00> : vector<8x8xf32>
    %69 = tpu.matmul %62, %65, %cst_32 {dimension_numbers = #tpu.dot_dimension_numbers<[1], [1], [0], [0], [0, 0, 1, 0], [], []>} : vector<8x16xf32>, vector<8x16xf32>, vector<8x8xf32> -> vector<8x8xf32>
    %cst_33 = arith.constant 2.500000e-01 : f32
    %70 = vector.broadcast %cst_33 : f32 to vector<8x8xf32>
    %71 = arith.mulf %69, %70 : vector<8x8xf32>
    %cst_34 = arith.constant dense<0xFF800000> : vector<8xf32>
    %72 = vector.multi_reduction <maximumf>, %71, %cst_34 [1] : vector<8x8xf32> to vector<8xf32>
    %73 = vector.shape_cast %72 : vector<8xf32> to vector<8x1xf32>
    %74 = vector.broadcast %73 : vector<8x1xf32> to vector<8x8xf32>
    %75 = arith.subf %71, %74 : vector<8x8xf32>
    %76 = math.exp %75 : vector<8x8xf32>
    %cst_35 = arith.constant dense<0.000000e+00> : vector<8xf32>
    %77 = vector.multi_reduction <add>, %76, %cst_35 [1] : vector<8x8xf32> to vector<8xf32>
    %78 = vector.shape_cast %77 : vector<8xf32> to vector<8x1xf32>
    %79 = tpu.reciprocal %78 {approx = true} : vector<8x1xf32> -> vector<8x1xf32>
    %80 = vector.broadcast %79 : vector<8x1xf32> to vector<8x8xf32>
    %81 = arith.mulf %76, %80 : vector<8x8xf32>
    %cst_36 = arith.constant dense<0.000000e+00> : vector<8x16xf32>
    %82 = tpu.matmul %81, %68, %cst_36 {dimension_numbers = #tpu.dot_dimension_numbers<[1], [0], [0], [1], [0, 0, 1, 1], [], []>} : vector<8x8xf32>, vector<8x16xf32>, vector<8x16xf32> -> vector<8x16xf32>
    %83 = arith.index_cast %c0_i32 : i32 to index
    %c0_37 = arith.constant 0 : index
    %c16_38 = arith.constant 16 : index
    %84 = vector.load %arg12[%83, %c0_37, %c16_38] : memref<1x8x128xf32, #tpu.memory_space<vmem>>, vector<1x8x16xf32>
    %85 = vector.shape_cast %84 : vector<1x8x16xf32> to vector<8x16xf32>
    %86 = vector.shape_cast %82 : vector<8x16xf32> to vector<1x8x16xf32>
    tpu.vector_store %arg12[%83, %c0_37, %c16_38], %86 {strides = array<i32>} : memref<1x8x128xf32, #tpu.memory_space<vmem>>, vector<1x8x16xf32>,
    %87 = arith.index_cast %c0_i32 : i32 to index
    %c0_39 = arith.constant 0 : index
    %c32 = arith.constant 32 : index
    %88 = vector.load %arg11[%87, %c0_39, %c32] : memref<1x8x384xf32, #tpu.memory_space<vmem>>, vector<1x8x16xf32>
    %89 = vector.shape_cast %88 : vector<1x8x16xf32> to vector<8x16xf32>
    %90 = arith.index_cast %c0_i32 : i32 to index
    %c0_40 = arith.constant 0 : index
    %c160 = arith.constant 160 : index
    %91 = vector.load %arg11[%90, %c0_40, %c160] : memref<1x8x384xf32, #tpu.memory_space<vmem>>, vector<1x8x16xf32>
    %92 = vector.shape_cast %91 : vector<1x8x16xf32> to vector<8x16xf32>
    %93 = arith.index_cast %c0_i32 : i32 to index
    %c0_41 = arith.constant 0 : index
    %c288 = arith.constant 288 : index
    %94 = vector.load %arg11[%93, %c0_41, %c288] : memref<1x8x384xf32, #tpu.memory_space<vmem>>, vector<1x8x16xf32>
    %95 = vector.shape_cast %94 : vector<1x8x16xf32> to vector<8x16xf32>
    %cst_42 = arith.constant dense<0.000000e+00> : vector<8x8xf32>
    %96 = tpu.matmul %89, %92, %cst_42 {dimension_numbers = #tpu.dot_dimension_numbers<[1], [1], [0], [0], [0, 0, 1, 0], [], []>} : vector<8x16xf32>, vector<8x16xf32>, vector<8x8xf32> -> vector<8x8xf32>
    %cst_43 = arith.constant 2.500000e-01 : f32
    %97 = vector.broadcast %cst_43 : f32 to vector<8x8xf32>
    %98 = arith.mulf %96, %97 : vector<8x8xf32>
    %cst_44 = arith.constant dense<0xFF800000> : vector<8xf32>
    %99 = vector.multi_reduction <maximumf>, %98, %cst_44 [1] : vector<8x8xf32> to vector<8xf32>
    %100 = vector.shape_cast %99 : vector<8xf32> to vector<8x1xf32>
    %101 = vector.broadcast %100 : vector<8x1xf32> to vector<8x8xf32>
    %102 = arith.subf %98, %101 : vector<8x8xf32>
    %103 = math.exp %102 : vector<8x8xf32>
    %cst_45 = arith.constant dense<0.000000e+00> : vector<8xf32>
    %104 = vector.multi_reduction <add>, %103, %cst_45 [1] : vector<8x8xf32> to vector<8xf32>
    %105 = vector.shape_cast %104 : vector<8xf32> to vector<8x1xf32>
    %106 = tpu.reciprocal %105 {approx = true} : vector<8x1xf32> -> vector<8x1xf32>
    %107 = vector.broadcast %106 : vector<8x1xf32> to vector<8x8xf32>
    %108 = arith.mulf %103, %107 : vector<8x8xf32>
    %cst_46 = arith.constant dense<0.000000e+00> : vector<8x16xf32>
    %109 = tpu.matmul %108, %95, %cst_46 {dimension_numbers = #tpu.dot_dimension_numbers<[1], [0], [0], [1], [0, 0, 1, 1], [], []>} : vector<8x8xf32>, vector<8x16xf32>, vector<8x16xf32> -> vector<8x16xf32>
    %110 = arith.index_cast %c0_i32 : i32 to index
    %c0_47 = arith.constant 0 : index
    %c32_48 = arith.constant 32 : index
    %111 = vector.load %arg12[%110, %c0_47, %c32_48] : memref<1x8x128xf32, #tpu.memory_space<vmem>>, vector<1x8x16xf32>
    %112 = vector.shape_cast %111 : vector<1x8x16xf32> to vector<8x16xf32>
    %113 = vector.shape_cast %109 : vector<8x16xf32> to vector<1x8x16xf32>
    tpu.vector_store %arg12[%110, %c0_47, %c32_48], %113 {strides = array<i32>} : memref<1x8x128xf32, #tpu.memory_space<vmem>>, vector<1x8x16xf32>,
    %114 = arith.index_cast %c0_i32 : i32 to index
    %c0_49 = arith.constant 0 : index
    %c48 = arith.constant 48 : index
    %115 = vector.load %arg11[%114, %c0_49, %c48] : memref<1x8x384xf32, #tpu.memory_space<vmem>>, vector<1x8x16xf32>
    %116 = vector.shape_cast %115 : vector<1x8x16xf32> to vector<8x16xf32>
    %117 = arith.index_cast %c0_i32 : i32 to index
    %c0_50 = arith.constant 0 : index
    %c176 = arith.constant 176 : index
    %118 = vector.load %arg11[%117, %c0_50, %c176] : memref<1x8x384xf32, #tpu.memory_space<vmem>>, vector<1x8x16xf32>
    %119 = vector.shape_cast %118 : vector<1x8x16xf32> to vector<8x16xf32>
    %120 = arith.index_cast %c0_i32 : i32 to index
    %c0_51 = arith.constant 0 : index
    %c304 = arith.constant 304 : index
    %121 = vector.load %arg11[%120, %c0_51, %c304] : memref<1x8x384xf32, #tpu.memory_space<vmem>>, vector<1x8x16xf32>
    %122 = vector.shape_cast %121 : vector<1x8x16xf32> to vector<8x16xf32>
    %cst_52 = arith.constant dense<0.000000e+00> : vector<8x8xf32>
    %123 = tpu.matmul %116, %119, %cst_52 {dimension_numbers = #tpu.dot_dimension_numbers<[1], [1], [0], [0], [0, 0, 1, 0], [], []>} : vector<8x16xf32>, vector<8x16xf32>, vector<8x8xf32> -> vector<8x8xf32>
    %cst_53 = arith.constant 2.500000e-01 : f32
    %124 = vector.broadcast %cst_53 : f32 to vector<8x8xf32>
    %125 = arith.mulf %123, %124 : vector<8x8xf32>
    %cst_54 = arith.constant dense<0xFF800000> : vector<8xf32>
    %126 = vector.multi_reduction <maximumf>, %125, %cst_54 [1] : vector<8x8xf32> to vector<8xf32>
    %127 = vector.shape_cast %126 : vector<8xf32> to vector<8x1xf32>
    %128 = vector.broadcast %127 : vector<8x1xf32> to vector<8x8xf32>
    %129 = arith.subf %125, %128 : vector<8x8xf32>
    %130 = math.exp %129 : vector<8x8xf32>
    %cst_55 = arith.constant dense<0.000000e+00> : vector<8xf32>
    %131 = vector.multi_reduction <add>, %130, %cst_55 [1] : vector<8x8xf32> to vector<8xf32>
    %132 = vector.shape_cast %131 : vector<8xf32> to vector<8x1xf32>
    %133 = tpu.reciprocal %132 {approx = true} : vector<8x1xf32> -> vector<8x1xf32>
    %134 = vector.broadcast %133 : vector<8x1xf32> to vector<8x8xf32>
    %135 = arith.mulf %130, %134 : vector<8x8xf32>
    %cst_56 = arith.constant dense<0.000000e+00> : vector<8x16xf32>
    %136 = tpu.matmul %135, %122, %cst_56 {dimension_numbers = #tpu.dot_dimension_numbers<[1], [0], [0], [1], [0, 0, 1, 1], [], []>} : vector<8x8xf32>, vector<8x16xf32>, vector<8x16xf32> -> vector<8x16xf32>
    %137 = arith.index_cast %c0_i32 : i32 to index
    %c0_57 = arith.constant 0 : index
    %c48_58 = arith.constant 48 : index
    %138 = vector.load %arg12[%137, %c0_57, %c48_58] : memref<1x8x128xf32, #tpu.memory_space<vmem>>, vector<1x8x16xf32>
    %139 = vector.shape_cast %138 : vector<1x8x16xf32> to vector<8x16xf32>
    %140 = vector.shape_cast %136 : vector<8x16xf32> to vector<1x8x16xf32>
    tpu.vector_store %arg12[%137, %c0_57, %c48_58], %140 {strides = array<i32>} : memref<1x8x128xf32, #tpu.memory_space<vmem>>, vector<1x8x16xf32>,
    %141 = arith.index_cast %c0_i32 : i32 to index
    %c0_59 = arith.constant 0 : index
    %c64 = arith.constant 64 : index
    %142 = vector.load %arg11[%141, %c0_59, %c64] : memref<1x8x384xf32, #tpu.memory_space<vmem>>, vector<1x8x16xf32>
    %143 = vector.shape_cast %142 : vector<1x8x16xf32> to vector<8x16xf32>
    %144 = arith.index_cast %c0_i32 : i32 to index
    %c0_60 = arith.constant 0 : index
    %c192 = arith.constant 192 : index
    %145 = vector.load %arg11[%144, %c0_60, %c192] : memref<1x8x384xf32, #tpu.memory_space<vmem>>, vector<1x8x16xf32>
    %146 = vector.shape_cast %145 : vector<1x8x16xf32> to vector<8x16xf32>
    %147 = arith.index_cast %c0_i32 : i32 to index
    %c0_61 = arith.constant 0 : index
    %c320 = arith.constant 320 : index
    %148 = vector.load %arg11[%147, %c0_61, %c320] : memref<1x8x384xf32, #tpu.memory_space<vmem>>, vector<1x8x16xf32>
    %149 = vector.shape_cast %148 : vector<1x8x16xf32> to vector<8x16xf32>
    %cst_62 = arith.constant dense<0.000000e+00> : vector<8x8xf32>
    %150 = tpu.matmul %143, %146, %cst_62 {dimension_numbers = #tpu.dot_dimension_numbers<[1], [1], [0], [0], [0, 0, 1, 0], [], []>} : vector<8x16xf32>, vector<8x16xf32>, vector<8x8xf32> -> vector<8x8xf32>
    %cst_63 = arith.constant 2.500000e-01 : f32
    %151 = vector.broadcast %cst_63 : f32 to vector<8x8xf32>
    %152 = arith.mulf %150, %151 : vector<8x8xf32>
    %cst_64 = arith.constant dense<0xFF800000> : vector<8xf32>
    %153 = vector.multi_reduction <maximumf>, %152, %cst_64 [1] : vector<8x8xf32> to vector<8xf32>
    %154 = vector.shape_cast %153 : vector<8xf32> to vector<8x1xf32>
    %155 = vector.broadcast %154 : vector<8x1xf32> to vector<8x8xf32>
    %156 = arith.subf %152, %155 : vector<8x8xf32>
    %157 = math.exp %156 : vector<8x8xf32>
    %cst_65 = arith.constant dense<0.000000e+00> : vector<8xf32>
    %158 = vector.multi_reduction <add>, %157, %cst_65 [1] : vector<8x8xf32> to vector<8xf32>
    %159 = vector.shape_cast %158 : vector<8xf32> to vector<8x1xf32>
    %160 = tpu.reciprocal %159 {approx = true} : vector<8x1xf32> -> vector<8x1xf32>
    %161 = vector.broadcast %160 : vector<8x1xf32> to vector<8x8xf32>
    %162 = arith.mulf %157, %161 : vector<8x8xf32>
    %cst_66 = arith.constant dense<0.000000e+00> : vector<8x16xf32>
    %163 = tpu.matmul %162, %149, %cst_66 {dimension_numbers = #tpu.dot_dimension_numbers<[1], [0], [0], [1], [0, 0, 1, 1], [], []>} : vector<8x8xf32>, vector<8x16xf32>, vector<8x16xf32> -> vector<8x16xf32>
    %164 = arith.index_cast %c0_i32 : i32 to index
    %c0_67 = arith.constant 0 : index
    %c64_68 = arith.constant 64 : index
    %165 = vector.load %arg12[%164, %c0_67, %c64_68] : memref<1x8x128xf32, #tpu.memory_space<vmem>>, vector<1x8x16xf32>
    %166 = vector.shape_cast %165 : vector<1x8x16xf32> to vector<8x16xf32>
    %167 = vector.shape_cast %163 : vector<8x16xf32> to vector<1x8x16xf32>
    tpu.vector_store %arg12[%164, %c0_67, %c64_68], %167 {strides = array<i32>} : memref<1x8x128xf32, #tpu.memory_space<vmem>>, vector<1x8x16xf32>,
    %168 = arith.index_cast %c0_i32 : i32 to index
    %c0_69 = arith.constant 0 : index
    %c80 = arith.constant 80 : index
    %169 = vector.load %arg11[%168, %c0_69, %c80] : memref<1x8x384xf32, #tpu.memory_space<vmem>>, vector<1x8x16xf32>
    %170 = vector.shape_cast %169 : vector<1x8x16xf32> to vector<8x16xf32>
    %171 = arith.index_cast %c0_i32 : i32 to index
    %c0_70 = arith.constant 0 : index
    %c208 = arith.constant 208 : index
    %172 = vector.load %arg11[%171, %c0_70, %c208] : memref<1x8x384xf32, #tpu.memory_space<vmem>>, vector<1x8x16xf32>
    %173 = vector.shape_cast %172 : vector<1x8x16xf32> to vector<8x16xf32>
    %174 = arith.index_cast %c0_i32 : i32 to index
    %c0_71 = arith.constant 0 : index
    %c336 = arith.constant 336 : index
    %175 = vector.load %arg11[%174, %c0_71, %c336] : memref<1x8x384xf32, #tpu.memory_space<vmem>>, vector<1x8x16xf32>
    %176 = vector.shape_cast %175 : vector<1x8x16xf32> to vector<8x16xf32>
    %cst_72 = arith.constant dense<0.000000e+00> : vector<8x8xf32>
    %177 = tpu.matmul %170, %173, %cst_72 {dimension_numbers = #tpu.dot_dimension_numbers<[1], [1], [0], [0], [0, 0, 1, 0], [], []>} : vector<8x16xf32>, vector<8x16xf32>, vector<8x8xf32> -> vector<8x8xf32>
    %cst_73 = arith.constant 2.500000e-01 : f32
    %178 = vector.broadcast %cst_73 : f32 to vector<8x8xf32>
    %179 = arith.mulf %177, %178 : vector<8x8xf32>
    %cst_74 = arith.constant dense<0xFF800000> : vector<8xf32>
    %180 = vector.multi_reduction <maximumf>, %179, %cst_74 [1] : vector<8x8xf32> to vector<8xf32>
    %181 = vector.shape_cast %180 : vector<8xf32> to vector<8x1xf32>
    %182 = vector.broadcast %181 : vector<8x1xf32> to vector<8x8xf32>
    %183 = arith.subf %179, %182 : vector<8x8xf32>
    %184 = math.exp %183 : vector<8x8xf32>
    %cst_75 = arith.constant dense<0.000000e+00> : vector<8xf32>
    %185 = vector.multi_reduction <add>, %184, %cst_75 [1] : vector<8x8xf32> to vector<8xf32>
    %186 = vector.shape_cast %185 : vector<8xf32> to vector<8x1xf32>
    %187 = tpu.reciprocal %186 {approx = true} : vector<8x1xf32> -> vector<8x1xf32>
    %188 = vector.broadcast %187 : vector<8x1xf32> to vector<8x8xf32>
    %189 = arith.mulf %184, %188 : vector<8x8xf32>
    %cst_76 = arith.constant dense<0.000000e+00> : vector<8x16xf32>
    %190 = tpu.matmul %189, %176, %cst_76 {dimension_numbers = #tpu.dot_dimension_numbers<[1], [0], [0], [1], [0, 0, 1, 1], [], []>} : vector<8x8xf32>, vector<8x16xf32>, vector<8x16xf32> -> vector<8x16xf32>
    %191 = arith.index_cast %c0_i32 : i32 to index
    %c0_77 = arith.constant 0 : index
    %c80_78 = arith.constant 80 : index
    %192 = vector.load %arg12[%191, %c0_77, %c80_78] : memref<1x8x128xf32, #tpu.memory_space<vmem>>, vector<1x8x16xf32>
    %193 = vector.shape_cast %192 : vector<1x8x16xf32> to vector<8x16xf32>
    %194 = vector.shape_cast %190 : vector<8x16xf32> to vector<1x8x16xf32>
    tpu.vector_store %arg12[%191, %c0_77, %c80_78], %194 {strides = array<i32>} : memref<1x8x128xf32, #tpu.memory_space<vmem>>, vector<1x8x16xf32>,
    %195 = arith.index_cast %c0_i32 : i32 to index
    %c0_79 = arith.constant 0 : index
    %c96 = arith.constant 96 : index
    %196 = vector.load %arg11[%195, %c0_79, %c96] : memref<1x8x384xf32, #tpu.memory_space<vmem>>, vector<1x8x16xf32>
    %197 = vector.shape_cast %196 : vector<1x8x16xf32> to vector<8x16xf32>
    %198 = arith.index_cast %c0_i32 : i32 to index
    %c0_80 = arith.constant 0 : index
    %c224 = arith.constant 224 : index
    %199 = vector.load %arg11[%198, %c0_80, %c224] : memref<1x8x384xf32, #tpu.memory_space<vmem>>, vector<1x8x16xf32>
    %200 = vector.shape_cast %199 : vector<1x8x16xf32> to vector<8x16xf32>
    %201 = arith.index_cast %c0_i32 : i32 to index
    %c0_81 = arith.constant 0 : index
    %c352 = arith.constant 352 : index
    %202 = vector.load %arg11[%201, %c0_81, %c352] : memref<1x8x384xf32, #tpu.memory_space<vmem>>, vector<1x8x16xf32>
    %203 = vector.shape_cast %202 : vector<1x8x16xf32> to vector<8x16xf32>
    %cst_82 = arith.constant dense<0.000000e+00> : vector<8x8xf32>
    %204 = tpu.matmul %197, %200, %cst_82 {dimension_numbers = #tpu.dot_dimension_numbers<[1], [1], [0], [0], [0, 0, 1, 0], [], []>} : vector<8x16xf32>, vector<8x16xf32>, vector<8x8xf32> -> vector<8x8xf32>
    %cst_83 = arith.constant 2.500000e-01 : f32
    %205 = vector.broadcast %cst_83 : f32 to vector<8x8xf32>
    %206 = arith.mulf %204, %205 : vector<8x8xf32>
    %cst_84 = arith.constant dense<0xFF800000> : vector<8xf32>
    %207 = vector.multi_reduction <maximumf>, %206, %cst_84 [1] : vector<8x8xf32> to vector<8xf32>
    %208 = vector.shape_cast %207 : vector<8xf32> to vector<8x1xf32>
    %209 = vector.broadcast %208 : vector<8x1xf32> to vector<8x8xf32>
    %210 = arith.subf %206, %209 : vector<8x8xf32>
    %211 = math.exp %210 : vector<8x8xf32>
    %cst_85 = arith.constant dense<0.000000e+00> : vector<8xf32>
    %212 = vector.multi_reduction <add>, %211, %cst_85 [1] : vector<8x8xf32> to vector<8xf32>
    %213 = vector.shape_cast %212 : vector<8xf32> to vector<8x1xf32>
    %214 = tpu.reciprocal %213 {approx = true} : vector<8x1xf32> -> vector<8x1xf32>
    %215 = vector.broadcast %214 : vector<8x1xf32> to vector<8x8xf32>
    %216 = arith.mulf %211, %215 : vector<8x8xf32>
    %cst_86 = arith.constant dense<0.000000e+00> : vector<8x16xf32>
    %217 = tpu.matmul %216, %203, %cst_86 {dimension_numbers = #tpu.dot_dimension_numbers<[1], [0], [0], [1], [0, 0, 1, 1], [], []>} : vector<8x8xf32>, vector<8x16xf32>, vector<8x16xf32> -> vector<8x16xf32>
    %218 = arith.index_cast %c0_i32 : i32 to index
    %c0_87 = arith.constant 0 : index
    %c96_88 = arith.constant 96 : index
    %219 = vector.load %arg12[%218, %c0_87, %c96_88] : memref<1x8x128xf32, #tpu.memory_space<vmem>>, vector<1x8x16xf32>
    %220 = vector.shape_cast %219 : vector<1x8x16xf32> to vector<8x16xf32>
    %221 = vector.shape_cast %217 : vector<8x16xf32> to vector<1x8x16xf32>
    tpu.vector_store %arg12[%218, %c0_87, %c96_88], %221 {strides = array<i32>} : memref<1x8x128xf32, #tpu.memory_space<vmem>>, vector<1x8x16xf32>,
    %222 = arith.index_cast %c0_i32 : i32 to index
    %c0_89 = arith.constant 0 : index
    %c112 = arith.constant 112 : index
    %223 = vector.load %arg11[%222, %c0_89, %c112] : memref<1x8x384xf32, #tpu.memory_space<vmem>>, vector<1x8x16xf32>
    %224 = vector.shape_cast %223 : vector<1x8x16xf32> to vector<8x16xf32>
    %225 = arith.index_cast %c0_i32 : i32 to index
    %c0_90 = arith.constant 0 : index
    %c240 = arith.constant 240 : index
    %226 = vector.load %arg11[%225, %c0_90, %c240] : memref<1x8x384xf32, #tpu.memory_space<vmem>>, vector<1x8x16xf32>
    %227 = vector.shape_cast %226 : vector<1x8x16xf32> to vector<8x16xf32>
    %228 = arith.index_cast %c0_i32 : i32 to index
    %c0_91 = arith.constant 0 : index
    %c368 = arith.constant 368 : index
    %229 = vector.load %arg11[%228, %c0_91, %c368] : memref<1x8x384xf32, #tpu.memory_space<vmem>>, vector<1x8x16xf32>
    %230 = vector.shape_cast %229 : vector<1x8x16xf32> to vector<8x16xf32>
    %cst_92 = arith.constant dense<0.000000e+00> : vector<8x8xf32>
    %231 = tpu.matmul %224, %227, %cst_92 {dimension_numbers = #tpu.dot_dimension_numbers<[1], [1], [0], [0], [0, 0, 1, 0], [], []>} : vector<8x16xf32>, vector<8x16xf32>, vector<8x8xf32> -> vector<8x8xf32>
    %cst_93 = arith.constant 2.500000e-01 : f32
    %232 = vector.broadcast %cst_93 : f32 to vector<8x8xf32>
    %233 = arith.mulf %231, %232 : vector<8x8xf32>
    %cst_94 = arith.constant dense<0xFF800000> : vector<8xf32>
    %234 = vector.multi_reduction <maximumf>, %233, %cst_94 [1] : vector<8x8xf32> to vector<8xf32>
    %235 = vector.shape_cast %234 : vector<8xf32> to vector<8x1xf32>
    %236 = vector.broadcast %235 : vector<8x1xf32> to vector<8x8xf32>
    %237 = arith.subf %233, %236 : vector<8x8xf32>
    %238 = math.exp %237 : vector<8x8xf32>
    %cst_95 = arith.constant dense<0.000000e+00> : vector<8xf32>
    %239 = vector.multi_reduction <add>, %238, %cst_95 [1] : vector<8x8xf32> to vector<8xf32>
    %240 = vector.shape_cast %239 : vector<8xf32> to vector<8x1xf32>
    %241 = tpu.reciprocal %240 {approx = true} : vector<8x1xf32> -> vector<8x1xf32>
    %242 = vector.broadcast %241 : vector<8x1xf32> to vector<8x8xf32>
    %243 = arith.mulf %238, %242 : vector<8x8xf32>
    %cst_96 = arith.constant dense<0.000000e+00> : vector<8x16xf32>
    %244 = tpu.matmul %243, %230, %cst_96 {dimension_numbers = #tpu.dot_dimension_numbers<[1], [0], [0], [1], [0, 0, 1, 1], [], []>} : vector<8x8xf32>, vector<8x16xf32>, vector<8x16xf32> -> vector<8x16xf32>
    %245 = arith.index_cast %c0_i32 : i32 to index
    %c0_97 = arith.constant 0 : index
    %c112_98 = arith.constant 112 : index
    %246 = vector.load %arg12[%245, %c0_97, %c112_98] : memref<1x8x128xf32, #tpu.memory_space<vmem>>, vector<1x8x16xf32>
    %247 = vector.shape_cast %246 : vector<1x8x16xf32> to vector<8x16xf32>
    %248 = vector.shape_cast %244 : vector<8x16xf32> to vector<1x8x16xf32>
    tpu.vector_store %arg12[%245, %c0_97, %c112_98], %248 {strides = array<i32>} : memref<1x8x128xf32, #tpu.memory_space<vmem>>, vector<1x8x16xf32>,
    %c1_i32 = arith.constant 1 : i32
    %c0_99 = arith.constant 0 : index
    %c0_100 = arith.constant 0 : index
    %c0_101 = arith.constant 0 : index
    %249 = vector.load %arg12[%c0_99, %c0_100, %c0_101] : memref<1x8x128xf32, #tpu.memory_space<vmem>>, vector<1x8x128xf32>
    %250 = vector.shape_cast %249 : vector<1x8x128xf32> to vector<8x128xf32>
    %c0_102 = arith.constant 0 : index
    %c0_103 = arith.constant 0 : index
    %c0_104 = arith.constant 0 : index
    %251 = vector.load %arg1[%c0_102, %c0_103, %c0_104] : memref<1x8x128xf32, #tpu.memory_space<vmem>>, vector<1x8x128xf32>
    %252 = vector.shape_cast %251 : vector<1x8x128xf32> to vector<8x128xf32>
    %253 = arith.addf %250, %252 : vector<8x128xf32>
    %cst_105 = arith.constant dense<0.000000e+00> : vector<8xf32>
    %254 = vector.multi_reduction <add>, %253, %cst_105 [1] : vector<8x128xf32> to vector<8xf32>
    %255 = vector.shape_cast %254 : vector<8xf32> to vector<8x1xf32>
    %cst_106 = arith.constant 1.280000e+02 : f32
    %256 = vector.broadcast %cst_106 : f32 to vector<8x1xf32>
    %257 = arith.divf %255, %256 : vector<8x1xf32>
    %258 = vector.broadcast %257 : vector<8x1xf32> to vector<8x128xf32>
    %259 = arith.subf %253, %258 : vector<8x128xf32>
    %260 = arith.mulf %259, %259 : vector<8x128xf32>
    %cst_107 = arith.constant dense<0.000000e+00> : vector<8xf32>
    %261 = vector.multi_reduction <add>, %260, %cst_107 [1] : vector<8x128xf32> to vector<8xf32>
    %262 = vector.shape_cast %261 : vector<8xf32> to vector<8x1xf32>
    %cst_108 = arith.constant 1.280000e+02 : f32
    %263 = vector.broadcast %cst_108 : f32 to vector<8x1xf32>
    %264 = arith.divf %262, %263 : vector<8x1xf32>
    %265 = vector.broadcast %257 : vector<8x1xf32> to vector<8x128xf32>
    %266 = arith.subf %253, %265 : vector<8x128xf32>
    %cst_109 = arith.constant 9.99999974E-6 : f32
    %267 = vector.broadcast %cst_109 : f32 to vector<8x1xf32>
    %268 = arith.addf %264, %267 : vector<8x1xf32>
    %269 = math.rsqrt %268 : vector<8x1xf32>
    %270 = vector.broadcast %269 : vector<8x1xf32> to vector<8x128xf32>
    %271 = arith.mulf %266, %270 : vector<8x128xf32>
    %272 = vector.broadcast %0 : vector<1x128xf32> to vector<8x128xf32>
    %273 = arith.mulf %271, %272 : vector<8x128xf32>
    %274 = vector.broadcast %1 : vector<1x128xf32> to vector<8x128xf32>
    %275 = arith.addf %273, %274 : vector<8x128xf32>
    %c0_110 = arith.constant 0 : index
    %c0_111 = arith.constant 0 : index
    %276 = vector.load %arg6[%c0_110, %c0_111] : memref<128x256xf32, #tpu.memory_space<vmem>>, vector<128x256xf32>
    %cst_112 = arith.constant dense<0.000000e+00> : vector<8x256xf32>
    %277 = tpu.matmul %275, %276, %cst_112 {dimension_numbers = #tpu.dot_dimension_numbers<[1], [0], [0], [1], [0, 0, 1, 1], [], []>} : vector<8x128xf32>, vector<128x256xf32>, vector<8x256xf32> -> vector<8x256xf32>
    %c0_113 = arith.constant 0 : index
    %c0_114 = arith.constant 0 : index
    %278 = vector.load %arg7[%c0_113, %c0_114] : memref<1x256xf32, #tpu.memory_space<vmem>>, vector<1x256xf32>
    %279 = vector.broadcast %278 : vector<1x256xf32> to vector<8x256xf32>
    %280 = arith.addf %277, %279 : vector<8x256xf32>
    %cst_115 = arith.constant 5.000000e-01 : f32
    %281 = vector.broadcast %cst_115 : f32 to vector<8x256xf32>
    %282 = arith.mulf %281, %280 : vector<8x256xf32>
    %cst_116 = arith.constant 0.707106769 : f32
    %283 = vector.broadcast %cst_116 : f32 to vector<8x256xf32>
    %284 = arith.mulf %280, %283 : vector<8x256xf32>
    %285 = math.erf %284 : vector<8x256xf32>
    %cst_117 = arith.constant 1.000000e+00 : f32
    %286 = vector.broadcast %cst_117 : f32 to vector<8x256xf32>
    %287 = arith.addf %286, %285 : vector<8x256xf32>
    %288 = arith.mulf %282, %287 : vector<8x256xf32>
    %c0_118 = arith.constant 0 : index
    %c0_119 = arith.constant 0 : index
    %289 = vector.load %arg8[%c0_118, %c0_119] : memref<256x128xf32, #tpu.memory_space<vmem>>, vector<256x128xf32>
    %cst_120 = arith.constant dense<0.000000e+00> : vector<8x128xf32>
    %290 = tpu.matmul %288, %289, %cst_120 {dimension_numbers = #tpu.dot_dimension_numbers<[1], [0], [0], [1], [0, 0, 1, 1], [], []>} : vector<8x256xf32>, vector<256x128xf32>, vector<8x128xf32> -> vector<8x128xf32>
    %c0_121 = arith.constant 0 : index
    %c0_122 = arith.constant 0 : index
    %291 = vector.load %arg9[%c0_121, %c0_122] : memref<1x128xf32, #tpu.memory_space<vmem>>, vector<1x128xf32>
    %292 = vector.broadcast %291 : vector<1x128xf32> to vector<8x128xf32>
    %293 = arith.addf %290, %292 : vector<8x128xf32>
    %294 = arith.addf %293, %253 : vector<8x128xf32>
    %295 = vector.shape_cast %294 : vector<8x128xf32> to vector<1x8x128xf32>
    %c0_123 = arith.constant 0 : index
    %c0_124 = arith.constant 0 : index
    %c0_125 = arith.constant 0 : index
    %296 = vector.load %arg10[%c0_123, %c0_124, %c0_125] : memref<1x8x128xf32, #tpu.memory_space<vmem>>, vector<1x8x128xf32>
    tpu.vector_store %arg10[%c0_123, %c0_124, %c0_125], %295 {strides = array<i32>} : memref<1x8x128xf32, #tpu.memory_space<vmem>>, vector<1x8x128xf32>,
    return
  }
  func.func @transform_0(%arg0: i32) -> (i32, i32, i32) {
    %c0_i32 = arith.constant 0 : i32
    %c0_i32_0 = arith.constant 0 : i32
    %c0_i32_1 = arith.constant 0 : i32
    return %arg0, %c0_i32, %c0_i32_0 : i32, i32, i32
  }
  func.func @transform_1(%arg0: i32) -> (i32, i32) {
    %c0_i32 = arith.constant 0 : i32
    %c0_i32_0 = arith.constant 0 : i32
    %c0_i32_1 = arith.constant 0 : i32
    return %c0_i32, %c0_i32_0 : i32, i32
  }
  func.func @transform_2(%arg0: i32) -> (i32, i32) {
    %c0_i32 = arith.constant 0 : i32
    %c0_i32_0 = arith.constant 0 : i32
    %c0_i32_1 = arith.constant 0 : i32
    return %c0_i32, %c0_i32_0 : i32, i32
  }
  func.func @transform_3(%arg0: i32) -> (i32, i32) {
    %c0_i32 = arith.constant 0 : i32
    %c0_i32_0 = arith.constant 0 : i32
    %c0_i32_1 = arith.constant 0 : i32
    return %c0_i32, %c0_i32_0 : i32, i32
  }
  func.func @transform_4(%arg0: i32) -> (i32, i32) {
    %c0_i32 = arith.constant 0 : i32
    %c0_i32_0 = arith.constant 0 : i32
    %c0_i32_1 = arith.constant 0 : i32
    return %c0_i32, %c0_i32_0 : i32, i32
  }
  func.func @transform_5(%arg0: i32) -> (i32, i32) {
    %c0_i32 = arith.constant 0 : i32
    %c0_i32_0 = arith.constant 0 : i32
    %c0_i32_1 = arith.constant 0 : i32
    return %c0_i32, %c0_i32_0 : i32, i32
  }
  func.func @transform_6(%arg0: i32) -> (i32, i32) {
    %c0_i32 = arith.constant 0 : i32
    %c0_i32_0 = arith.constant 0 : i32
    %c0_i32_1 = arith.constant 0 : i32
    return %c0_i32, %c0_i32_0 : i32, i32
  }
  func.func @transform_7(%arg0: i32) -> (i32, i32) {
    %c0_i32 = arith.constant 0 : i32
    %c0_i32_0 = arith.constant 0 : i32
    %c0_i32_1 = arith.constant 0 : i32
    return %c0_i32, %c0_i32_0 : i32, i32
  }
  func.func @transform_8(%arg0: i32) -> (i32, i32) {
    %c0_i32 = arith.constant 0 : i32
    %c0_i32_0 = arith.constant 0 : i32
    %c0_i32_1 = arith.constant 0 : i32
    return %c0_i32, %c0_i32_0 : i32, i32
  }
  func.func @transform_9(%arg0: i32) -> (i32, i32, i32) {
    %c0_i32 = arith.constant 0 : i32
    %c0_i32_0 = arith.constant 0 : i32
    %c0_i32_1 = arith.constant 0 : i32
    return %arg0, %c0_i32, %c0_i32_0 : i32, i32, i32
  }
}

</mosaic_0001>

<bundles_post_ra>
// kernel: tpu_custom_call.1
= control target key start
LH: loop header
LB: loop body
LE: loop exit
PB: predicated region body
PF: predicated region fallthrough
CT: control target
= control target key end

     0   :  { %s3590_s0 = inlined_call_operand.hbm [shape: f32[2,8,128], index: 0, kind: input, shape index: {}]   ;;  %s3591_s1 = inlined_call_operand.hbm [shape: f32[1,128], index: 1, kind: input, shape index: {}]   ;;  %s3592_s2 = inlined_call_operand.hbm [shape: f32[1,128], index: 2, kind: input, shape index: {}]   ;;  %s3593_s3 = inlined_call_operand.hbm [shape: f32[128,384], index: 3, kind: input, shape index: {}]   ;;  %s3594_s4 = inlined_call_operand.vmem [shape: f32[1,384], index: 4, kind: input, shape index: {}]   ;;  %s3595_s5 = inlined_call_operand.hbm [shape: f32[128,256], index: 5, kind: input, shape index: {}]   ;;  %s3596_s6 = inlined_call_operand.vmem [shape: f32[1,256], index: 6, kind: input, shape index: {}]   ;;  %s3597_s7 = inlined_call_operand.hbm [shape: f32[256,128], index: 7, kind: input, shape index: {}]   ;;  %s3598_s8 = inlined_call_operand.vmem [shape: f32[1,128], index: 8, kind: input, shape index: {}]   ;;  %s3599_s9 = inlined_call_operand.hbm [shape: f32[2,8,128], index: 9, kind: output, shape index: {}]  }
   0x1   :  { %3604 = sst [smem:[#allocation21_spill]] %s3591_s1 }
   0x2   :  { %3605 = sst [smem:[#allocation22_spill]] %s3592_s2 }
   0x3   :  { %3606 = sst [smem:[#allocation23_spill]] %s3593_s3 }
   0x4   :  { %3607 = sst [smem:[#allocation24_spill]] %s3595_s5 }
   0x5   :  { %14 = vsyncpa [#allocation5], 0 }
   0x6   :  { %16 = vsyncpa [#allocation5 + $0x1], 0 }
   0x7   :  { %17 = vsyncpa [#allocation8], 0 }
   0x8   :  { %18 = vsyncpa [#allocation11], 0 }
   0x9   :  { %19 = vsyncpa [#allocation14], 0 }
   0xa   :  { %20 = vsyncpa [#allocation6], 0 }
   0xb   :  { %22 = vsyncpa [#allocation6 + $0x1], 0  ;;  %s3160_s30 = smov 0   ;;  %s3162_s10 = smov 0  }
   0xc   :  { %s3164_s11 = smov 0   ;;  %s3166_s12 = smov 0  }
   0xd LB: > { %s3088_s13 = smov [#allocation7]   ;;  %s3181_s15 = sadd.s32 4294967295, %s3086_s12   ;;  %s3086_s12 = sphi %s3166_s12, %s3633_s12   ;;  %s3082_s11 = sphi %s3164_s11, %s3632_s11   ;;  %s3078_s10 = sphi %s3162_s10, %s3631_s10   ;;  %s3074_s30 = sphi %s3160_s30, %s3630_s30  }
   0xe   : > { %s266_s14 = sshll.u32 %s3088_s13, 4  ;;  %p2453_p0 = scmp.ge.s32.totalorder %s3086_s12, 1  ;;  %s267_s14 = int_to_ptr.vmem [resolvable:$true] %s266_s14 }
   0xf   : > { %p3600_p1 = scmp.eq.s32.totalorder %s3181_s15, 0  ;;  %p253_p2 = scmp.lt.s32.totalorder %s3086_s12, 3 }
  0x10   : > { %s3089_s17 = smov [#allocation10]   ;;  %s3090_s20 = smov [#allocation9]  }
  0x11   : > { %p3186_p3 = pnand %p2453_p0, %p253_p2  ;;  %s287_s18 = sshll.u32 %s3089_s17, 4  ;;  %s3193_s18 = int_to_ptr.vmem [resolvable:$true] %s287_s18 }
  0x12   : > { %s277_s21 = sshll.u32 %s3090_s20, 4  ;;  %s2863_s23 = scalar_lea.vmem %s267_s14, 16  ;;  %s3201_s21 = int_to_ptr.vmem [resolvable:$true] %s277_s21 }
  0x13   : > { %s3608_s16 = scalar_select %p3186_p3, 1, 0 }
  0x14   : > { %p2724_p5 = pneg %p3186_p3  ;;  %p2864_p8 = scmp.ne.s32.totalorder %s267_s14, %s2863_s23 }
  0x15   : > { %s2870_s24 = scalar_lea.vmem %s267_s14, 32  ;;  %p2871_p11 = scmp.lt.s32.totalorder %s267_s14, %s267_s14 }
  0x16   : > { %p3197_p6 = pnand %p2724_p5, %p3600_p1  ;;  %p2872_p12 = scmp.lt.s32.totalorder %s2870_s24, %s2863_s23 }
  0x18   : > { %p3205_p7 = pneg %p3197_p6  ;;  %p2873_p13 = por %p2872_p12, %p2871_p11 }
  0x1a   : > { %p2866_p9 = pnand %p2864_p8, %p3205_p7 }
  0x1c   : > { %p2867_p10 = pneg %p2866_p9 }
  0x1e   : > { %p2874_p0 = pnand %p2873_p13, %p2867_p10 }
  0x20   : > { %2877 = shalt.err (!%p2874_p0)
}
  0x21   : > { %s3611_s1 = sld [smem:[#allocation21_spill]]  ;;  %s2889_s27 = scalar_lea.vmem %s3193_s18, 6144 }
  0x22   : > { %p2890_p2 = scmp.ne.s32.totalorder %s3193_s18, %s2889_s27  ;;  %p2897_p9 = scmp.lt.s32.totalorder %s3193_s18, %s3193_s18 }
  0x23   : > { %p2898_p11 = scmp.lt.s32.totalorder %s2889_s27, %s2889_s27 }
  0x24   : > { %p2892_p5 = pnand %p2890_p2, %p3205_p7 }
  0x25   : > { %p2899_p10 = por %p2898_p11, %p2897_p9 }
  0x26   : > { %p2893_p8 = pneg %p2892_p5 }
  0x27   : > { %2727 = dma.hbm_to_vmem [thread:$0]  (!%p3197_p6), %s3611_s1, 16, %s267_s14, [#allocation8]  }
  0x28   : > { %p2900_p12 = pnand %p2899_p10, %p2893_p8 }
  0x2a   : > { %2903 = shalt.err (!%p2900_p12)
}
  0x2b   : > { %s3091_s28 = smov 384   ;;  %s3092_s29 = smov 24  }
  0x2c   : > { %s3612_s3 = sld [smem:[#allocation23_spill]]  ;;  %s2915_s17 = scalar_lea.vmem %s3201_s21, 16 }
  0x2d   : > { %p2916_p13 = scmp.ne.s32.totalorder %s3201_s21, %s2915_s17  ;;  %s2922_s20 = scalar_lea.vmem %s3201_s21, 32 }
  0x2e   : > { %p2923_p5 = scmp.lt.s32.totalorder %s3201_s21, %s3201_s21  ;;  %p2924_p8 = scmp.lt.s32.totalorder %s2922_s20, %s2915_s17 }
  0x2f   : > { %p2918_p0 = pnand %p2916_p13, %p3205_p7 }
  0x30   : > { %p2925_p9 = por %p2924_p8, %p2923_p5 }
  0x31   : > { %p2919_p2 = pneg %p2918_p0 }
  0x32   : > { %2733 = dma.hbm_to_vmem [thread:$0]  (!%p3197_p6), %s3612_s3, 6144, %s3193_s18, [#allocation11], %s3091_s28, %s3091_s28, %s3092_s29  }
  0x33   : > { %p2926_p11 = pnand %p2925_p9, %p2919_p2 }
  0x35   : > { %2929 = shalt.err (!%p2926_p11)
}
  0x36   : > { %s3613_s2 = sld [smem:[#allocation22_spill]]  ;;  %s3093_s18 = smov [#allocation12]  }
  0x37   : > { %s303_s25 = sshll.u32 %s3093_s18, 4  ;;  %s304_s25 = int_to_ptr.vmem [resolvable:$true] %s303_s25 }
  0x38   : > { %s2941_s26 = scalar_lea.vmem %s304_s25, 4096  ;;  %p2949_p0 = scmp.lt.s32.totalorder %s304_s25, %s304_s25 }
  0x39   : > { %p2942_p10 = scmp.ne.s32.totalorder %s304_s25, %s2941_s26  ;;  %p2950_p5 = scmp.lt.s32.totalorder %s2941_s26, %s2941_s26 }
  0x3b   : > { %p2944_p12 = pnand %p2942_p10, %p3205_p7  ;;  %p2951_p2 = por %p2950_p5, %p2949_p0 }
  0x3c   : > { %2730 = dma.hbm_to_vmem [thread:$0]  (!%p3197_p6), %s3613_s2, 16, %s3201_s21, [#allocation8]  }
  0x3d   : > { %p2945_p13 = pneg %p2944_p12 }
  0x3f   : > { %p2952_p8 = pnand %p2951_p2, %p2945_p13 }
  0x41   : > { %2955 = shalt.err (!%p2952_p8)
}
  0x42   : > { %s3094_s27 = smov 256   ;;  %s3095_s28 = smov 16  }
  0x43   : > { %s3614_s5 = sld [smem:[#allocation24_spill]]  ;;  %s3096_s13 = smov [#allocation13]  }
  0x44   : > { %s319_s14 = sshll.u32 %s3096_s13, 4  ;;  %s320_s14 = int_to_ptr.vmem [resolvable:$true] %s319_s14 }
  0x45   : > { %s2967_s17 = scalar_lea.vmem %s320_s14, 4096  ;;  %p2975_p12 = scmp.lt.s32.totalorder %s320_s14, %s320_s14 }
  0x46   : > { %p2968_p9 = scmp.ne.s32.totalorder %s320_s14, %s2967_s17  ;;  %p2976_p13 = scmp.lt.s32.totalorder %s2967_s17, %s2967_s17 }
  0x48   : > { %p2970_p11 = pnand %p2968_p9, %p3205_p7  ;;  %p2977_p0 = por %p2976_p13, %p2975_p12 }
  0x49   : > { %2736 = dma.hbm_to_vmem [thread:$0]  (!%p3197_p6), %s3614_s5, 4096, %s304_s25, [#allocation11], %s3094_s27, %s3094_s27, %s3095_s28  }
  0x4a   : > { %p2971_p10 = pneg %p2970_p11 }
  0x4c   : > { %p2978_p5 = pnand %p2977_p0, %p2971_p10 }
  0x4e   : > { %2981 = shalt.err (!%p2978_p5)
}
  0x4f   : > { %s3097_s20 = smov 128   ;;  %s3098_s22 = smov 8  }
  0x50   : > { %2739 = dma.hbm_to_vmem [thread:$0]  (!%p3197_p6), %s3597_s7, 4096, %s320_s14, [#allocation14], %s3097_s20, %s3097_s20, %s3098_s22  }
  0x51   : > { %s2452_s18 = sadd.s32 4294967294, %s3086_s12   ;;  %s3257_s25 = sadd.s32 1, %s3086_s12  }
  0x52   : > { %s35_s26 = sadd.s32 1, %s3082_s11  ;;  %s32_s27 = ssub.s32 %s3086_s12, %s3257_s25 }
  0x53   : > { %p42_p7 = scmp.ne.s32.totalorder %s3082_s11, %s3078_s10  ;;  %p33_p2 = scmp.eq.s32.totalorder %s32_s27, 0 }
  0x54   : > { %p43_p8 = scmp.eq.s32.totalorder %s3086_s12, 0  ;;  %p48_p9 = scmp.ne.s32.totalorder %s3078_s10, %s3074_s30 }
  0x55   : > { %p240_p11 = scmp.eq.s32.totalorder %s3181_s15, 1  ;;  %p246_p13 = scmp.eq.s32.totalorder %s2452_s18, 1 }
  0x56   : > { %s3269_s28 = scalar_select %p33_p2, %s3082_s11, %s35_s26  }
  0x57   : > { %p44_p10 = por %p43_p8, %p42_p7  ;;  %p3273_p12 = por %p3600_p1, %p48_p9 }
  0x58   : > { %p3277_p6 = por %p240_p11, %p42_p7  ;;  %p2753_p0 = scmp.lt.s32.totalorder %s3086_s12, 2 }
  0x59   : > { %s3615_s19 = scalar_select %p3273_p12, 1, 0 }
  0x5a   : > { %s3616_s29 = scalar_select %p3277_p6, 1, 0 }
  0x5b   : > { %s336_s21 = sand.u32 1, %s3082_s11   ;;  %p3283_p5 = por %p246_p13, %p48_p9 }
  0x5c   : > { %s2460_s14 = sshll.u32 %s336_s21, 3  ;;  %s2461_s17 = sshll.u32 %s3086_s12, 7 }
  0x5d   : > { %s3617_s13 = scalar_select %p3283_p5, 1, 0 }
  0x5e   : > { %s3291_s23 = scalar_lea.hbm %s3590_s0, %s2461_s17  ;;  %s340_s24 = scalar_lea.vmem [#allocation4], %s2460_s14 }
  0x5f   : > { %s347_s26 = sshll.u32 %s340_s24, 4  ;;  %p3293_p7 = pnand %p2753_p0, %p44_p10  ;;  %s348_s26 = int_to_ptr.vmem [resolvable:$true] %s347_s26 }
  0x60   : > { %s337_s27 = scalar_lea.sflag [#allocation5], %s336_s21  ;;  %s2982_s1 = scalar_lea.hbm %s3291_s23, 128 }
  0x61   : > { %p2983_p2 = scmp.ne.s32.totalorder %s3291_s23, %s2982_s1  ;;  %p2984_p8 = pneg %p3293_p7 }
  0x62   : > { %s2987_s22 = scalar_lea.hbm %s3590_s0, 256  ;;  %p2988_p10 = scmp.lt.s32.totalorder %s3291_s23, %s3590_s0 }
  0x63   : > { %p2985_p9 = pnand %p2984_p8, %p2983_p2  ;;  %p2989_p13 = scmp.lt.s32.totalorder %s2987_s22, %s2982_s1 }
  0x65   : > { %p2986_p11 = pneg %p2985_p9  ;;  %p2990_p0 = por %p2989_p13, %p2988_p10 }
  0x67   : > { %p2991_p4 = pnand %p2990_p0, %p2986_p11 }
  0x69   : > { %2994 = shalt.err (!%p2991_p4)
}
  0x6a   : > { %s2995_s24 = scalar_lea.vmem %s348_s26, 128  ;;  %s3099_s21 = smov [#allocation4]  }
  0x6b   : > { %p2996_p1 = scmp.ne.s32.totalorder %s348_s26, %s2995_s24  ;;  %s3000_s3 = sshll.u32 %s3099_s21, 4  ;;  %s3001_s3 = int_to_ptr.vmem [resolvable:$false] %s3000_s3 }
  0x6c   : > { %s3002_s5 = scalar_lea.vmem %s3001_s3, 256  ;;  %p3003_p2 = scmp.lt.s32.totalorder %s348_s26, %s3001_s3 }
  0x6d   : > { %p2998_p5 = pnand %p2996_p1, %p2984_p8  ;;  %p3004_p9 = scmp.lt.s32.totalorder %s3002_s5, %s2995_s24 }
  0x6f   : > { %p2999_p6 = pneg %p2998_p5  ;;  %p3005_p12 = por %p3004_p9, %p3003_p2 }
  0x71   : > { %p3006_p3 = pnand %p3005_p12, %p2999_p6 }
  0x73   : > { %3009 = shalt.err (!%p3006_p3)
}
  0x74   : > { %2743 = dma.hbm_to_vmem [thread:$0]  (!%p3293_p7), %s3291_s23, 128, %s348_s26, %s337_s27  }
  0x75   : > { %p3619_p11 = scmp.ne.s32.totalorder %s3608_s16, 0 }
  0x76   : > { %s3314_s1 = sand.u32 (!%p3619_p11), 1, %s3078_s10   ;;  %p3620_p1 = scmp.ne.s32.totalorder (!%p3619_p11), %s3615_s19, 0 }
  0x77   : > { %356 = sbr.rel (%p3619_p11) target bundleno = 2398 (0x95e), region = 56  ;;  %s2463_s2 = sshll.u32 (!%p3619_p11), %s3314_s1, 3 }
  0x78   : > { %s359_s3 = scalar_lea.sflag (!%p3619_p11), [#allocation5], %s3314_s1  ;;  %s362_s5 = scalar_lea.vmem (!%p3619_p11), [#allocation4], %s2463_s2 }
  0x7c   : > { %3053 = dma.done.wait (%p3620_p1), %s359_s3, 128  }
  0x7d   : > { %3055 = vsyncadd (%p3620_p1), %s359_s3, 4294967168  ;;  %p3621_p3 = scmp.eq.s32.totalorder %s3181_s15, 0 }
  0x7f   : > { %3057 = dma.done.wait (%p3621_p3), [#allocation8], 32   ;;  %p3622_p4 = pmov %p3621_p3 }
  0x80   : > { %p3623_p12 = pmov %p3621_p3 }
  0x81   : > { %3059 = vsyncadd (%p3622_p4), [#allocation8], 4294967264 }
  0x82   : > { %3061 = dma.done.wait (%p3623_p12), [#allocation11], 10240   ;;  %p3624_p6 = pmov %p3621_p3 }
  0x83   : > { %p3625_p5 = pmov %p3621_p3 }
  0x84   : > { %3063 = vsyncadd (%p3624_p6), [#allocation11], 4294957056 }
  0x85   : > { %3065 = dma.done.wait (%p3625_p5), [#allocation14], 4096   ;;  %p3626_p7 = pmov %p3621_p3 }
  0x86   : > { %v3336_v0 = vld [vmem:[%s362_s5] sm:$0xff]  ;;  %v3100_v4 = vmov 0.0   ;;  %v490_v7 = vld [vmem:[#allocation10 + $0x160] sm:$0xff]  ;;  %vm3101_vm0 = vmmov 0   ;;  %v3365_v58 = vld [vmem:[#allocation7] ss:$0 sm:$0xff]  ;;  %v496_v63 = vlaneseq }
  0x87   : > { %3067 = vsyncadd (%p3626_p7), [#allocation14], 4294963200  ;;  %420 = vadd.xlane.f32.xlu0 %v3336_v0  ;;  %v492_v1 = vld [vmem:[#allocation10 + $0x170] sm:$0xff]  ;;  %v491_v2 = vld [vmem:[#allocation10 + $0x168] sm:$0xff]  ;;  %2585 = vmatprep.subr.mxu1 %v3100_v4  ;;  %vm658_vm1 = vcmask 130048   ;;  %s3102_s23 = smov 112  }
  0x88   : > { %v493_v3 = vld [vmem:[#allocation10 + $0x178] sm:$0xff]  ;;  %511 = vmatprep.subr.mxu0 %v492_v1  ;;  %v488_v6 = vld [vmem:[#allocation10 + $0x150] sm:$0xff]  ;;  %v486_v8 = vld [vmem:[#allocation10 + $0x140] sm:$0xff]  ;;  %575 = vmatprep.mubr.f32.mxu0 %v3100_v4  ;;  %v3376_v1 = vshrl.u32 %v496_v63, 7  ;;  %s3103_s26 = smov 96   ;;  %s3104_s18 = smov 48  }
  0x89   : > { %v489_v5 = vld [vmem:[#allocation10 + $0x158] sm:$0xff]  ;;  %512 = vmatpush1.msra.mxu0 %v491_v2  ;;  %2586 = vmatpush3.msra.mxu1 %v493_v3  ;;  %v487_v10 = vld [vmem:[#allocation10 + $0x148] sm:$0xff]  ;;  %v482_v12 = vld [vmem:[#allocation10 + $0x120] sm:$0xff]  ;;  %s3105_s27 = smov 32   ;;  %s3106_s17 = smov 80   ;;  %vm736_vm2 = vcmask 64512  }
  0x8a   : > { %513 = vmatprep.subr.mxu0 %v489_v5  ;;  %2587 = vmatprep.subr.mxu1 %v3100_v4  ;;  %v485_v9 = vld [vmem:[#allocation10 + $0x138] sm:$0xff]  ;;  %v483_v11 = vld [vmem:[#allocation10 + $0x128] sm:$0xff]  ;;  %v484_v13 = vld [vmem:[#allocation10 + $0x130] sm:$0xff]  ;;  %v498_v2 = vsub.s32 0, %v3376_v1  ;;  %v506_v3 = vsub.s32 2, %v3376_v1  ;;  %s3107_s20 = smov 16  }
  0x8b   : > { %514 = vmatpush1.msra.mxu0 %v488_v6  ;;  %2588 = vmatpush3.msra.mxu1 %v490_v7  ;;  %v480_v18 = vld [vmem:[#allocation10 + $0x110] sm:$0xff]  ;;  %v479_v19 = vld [vmem:[#allocation10 + $0x108] sm:$0xff]  ;;  %v481_v20 = vld [vmem:[#allocation10 + $0x118] sm:$0xff]  ;;  %v502_v6 = vsub.s32 1, %v3376_v1  ;;  %s3108_s22 = smov 64   ;;  %vm998_vm3 = vcmask 261248  }
  0x8c   : > { %515 = vmatprep.subr.mxu0 %v486_v8  ;;  %2589 = vmatprep.subr.mxu1 %v3100_v4  ;;  %v477_v21 = vld [vmem:[#allocation10 + $0xf8] sm:$0xff]  ;;  %v476_v22 = vld [vmem:[#allocation10 + $0xf0] sm:$0xff]  ;;  %v478_v23 = vld [vmem:[#allocation10 + $0x100] sm:$0xff]  ;;  %vm1176_vm4 = vcmask 392448   ;;  %vm1354_vm5 = vcmask 523648   ;;  %vm1532_vm6 = vcmask 654848  }
  0x8d   : > { %516 = vmatpush1.msra.mxu0 %v485_v9  ;;  %2590 = vmatpush3.msra.mxu1 %v487_v10  ;;  %v474_v24 = vld [vmem:[#allocation10 + $0xe0] sm:$0xff]  ;;  %v473_v25 = vld [vmem:[#allocation10 + $0xd8] sm:$0xff]  ;;  %v475_v26 = vld [vmem:[#allocation10 + $0xe8] sm:$0xff]  ;;  %vm1710_vm7 = vcmask 786048   ;;  %vm1888_vm8 = vcmask 917248   ;;  %vm2066_vm9 = vcmask 1048448  }
  0x8e   : > { %517 = vmatprep.subr.mxu0 %v483_v11  ;;  %2591 = vmatprep.subr.mxu1 %v3100_v4  ;;  %v471_v27 = vld [vmem:[#allocation10 + $0xc8] sm:$0xff]  ;;  %v470_v28 = vld [vmem:[#allocation10 + $0xc0] sm:$0xff]  ;;  %v472_v29 = vld [vmem:[#allocation10 + $0xd0] sm:$0xff]  ;;  %s2498_s5 = sshll.u32 %s3181_s15, 7  ;;  %s416_s16 = scalar_lea.vmem [#allocation15], %s2463_s2 }
  0x8f   : > { %518 = vmatpush1.msra.mxu0 %v482_v12  ;;  %2592 = vmatpush3.msra.mxu1 %v484_v13  ;;  %v468_v30 = vld [vmem:[#allocation10 + $0xb0] sm:$0xff]  ;;  %v467_v31 = vld [vmem:[#allocation10 + $0xa8] sm:$0xff]  ;;  %v469_v32 = vld [vmem:[#allocation10 + $0xb8] sm:$0xff]  ;;  %s2334_s19 = sshll.u32 %s416_s16, 4  ;;  %p3627_p10 = scmp.ne.s32.totalorder %s3616_s29, 0  ;;  %s2335_s19 = int_to_ptr.vmem [resolvable:$true] %s2334_s19 }
  0x90   : > { %2593 = vmatprep.subr.mxu1 %v3100_v4  ;;  %519 = vmatprep.subr.mxu0 %v480_v18  ;;  %v465_v33 = vld [vmem:[#allocation10 + $0x98] sm:$0xff]  ;;  %v464_v34 = vld [vmem:[#allocation10 + $0x90] sm:$0xff]  ;;  %v466_v35 = vld [vmem:[#allocation10 + $0xa0] sm:$0xff] }
  0x91   : > { %520 = vmatpush1.msra.mxu0 %v479_v19  ;;  %2594 = vmatpush3.msra.mxu1 %v481_v20  ;;  %v462_v36 = vld [vmem:[#allocation10 + $0x80] sm:$0xff]  ;;  %v461_v37 = vld [vmem:[#allocation10 + $0x78] sm:$0xff]  ;;  %v463_v38 = vld [vmem:[#allocation10 + $0x88] sm:$0xff] }
  0x92   : > { %521 = vmatprep.subr.mxu0 %v477_v21  ;;  %2595 = vmatprep.subr.mxu1 %v3100_v4  ;;  %v459_v39 = vld [vmem:[#allocation10 + $0x68] sm:$0xff]  ;;  %v458_v40 = vld [vmem:[#allocation10 + $0x60] sm:$0xff]  ;;  %v460_v41 = vld [vmem:[#allocation10 + $0x70] sm:$0xff] }
  0x93   : > { %522 = vmatpush1.msra.mxu0 %v476_v22  ;;  %2596 = vmatpush3.msra.mxu1 %v478_v23  ;;  %v456_v42 = vld [vmem:[#allocation10 + $0x50] sm:$0xff]  ;;  %v455_v43 = vld [vmem:[#allocation10 + $0x48] sm:$0xff]  ;;  %v457_v44 = vld [vmem:[#allocation10 + $0x58] sm:$0xff] }
  0x94   : > { %523 = vmatprep.subr.mxu0 %v474_v24  ;;  %2597 = vmatprep.subr.mxu1 %v3100_v4  ;;  %v453_v45 = vld [vmem:[#allocation10 + $0x38] sm:$0xff]  ;;  %v452_v46 = vld [vmem:[#allocation10 + $0x30] sm:$0xff]  ;;  %v454_v47 = vld [vmem:[#allocation10 + $0x40] sm:$0xff] }
  0x95   : > { %524 = vmatpush1.msra.mxu0 %v473_v25  ;;  %2598 = vmatpush3.msra.mxu1 %v475_v26  ;;  %v450_v48 = vld [vmem:[#allocation10 + $0x20] sm:$0xff]  ;;  %v449_v49 = vld [vmem:[#allocation10 + $0x18] sm:$0xff]  ;;  %v451_v50 = vld [vmem:[#allocation10 + $0x28] sm:$0xff] }
  0x96   : > { %525 = vmatprep.subr.mxu0 %v471_v27  ;;  %2599 = vmatprep.subr.mxu1 %v3100_v4  ;;  %v447_v51 = vld [vmem:[#allocation10 + $0x8] sm:$0xff]  ;;  %v446_v52 = vld [vmem:[#allocation10] sm:$0xff]  ;;  %v448_v53 = vld [vmem:[#allocation10 + $0x10] sm:$0xff] }
  0x97   : > { %526 = vmatpush1.msra.mxu0 %v470_v28  ;;  %2600 = vmatpush3.msra.mxu1 %v472_v29  ;;  %v3368_v60 = vld [vmem:[#allocation9] ss:$0 sm:$0xff]  ;;  %v494_v5 = vld [vmem:[%s3594_s4] sm:$0x7] }
  0x98   : > { %527 = vmatprep.subr.mxu0 %v468_v30  ;;  %2601 = vmatprep.subr.mxu1 %v3100_v4  ;;  %v499_v7 = vrot.slane %v494_v5, %v498_v2  ;;  %v507_v8 = vrot.slane %v494_v5, %v506_v3  ;;  %v503_v9 = vrot.slane %v494_v5, %v502_v6 }
  0x99   : > { %528 = vmatpush1.msra.mxu0 %v467_v31  ;;  %2602 = vmatpush3.msra.mxu1 %v469_v32 }
  0x9a   : > { %529 = vmatprep.subr.mxu0 %v465_v33  ;;  %2603 = vmatprep.subr.mxu1 %v3100_v4 }
  0x9b   : > { %530 = vmatpush1.msra.mxu0 %v464_v34  ;;  %2604 = vmatpush3.msra.mxu1 %v466_v35 }
  0x9c   : > { %531 = vmatprep.subr.mxu0 %v462_v36  ;;  %2605 = vmatprep.subr.mxu1 %v3100_v4 }
  0x9d   : > { %532 = vmatpush1.msra.mxu0 %v461_v37  ;;  %2606 = vmatpush3.msra.mxu1 %v463_v38 }
  0x9e   : > { %533 = vmatprep.subr.mxu0 %v459_v39  ;;  %2607 = vmatprep.subr.mxu1 %v3100_v4 }
  0x9f   : > { %534 = vmatpush1.msra.mxu0 %v458_v40  ;;  %2608 = vmatpush3.msra.mxu1 %v460_v41 }
  0xa0   : > { %535 = vmatprep.subr.mxu0 %v456_v42  ;;  %2609 = vmatprep.subr.mxu1 %v3100_v4 }
  0xa1   : > { %536 = vmatpush1.msra.mxu0 %v455_v43  ;;  %2610 = vmatpush3.msra.mxu1 %v457_v44 }
  0xa2   : > { %537 = vmatprep.subr.mxu0 %v453_v45  ;;  %2611 = vmatprep.subr.mxu1 %v3100_v4 }
  0xa3   : > { %538 = vmatpush1.msra.mxu0 %v452_v46  ;;  %2612 = vmatpush3.msra.mxu1 %v454_v47 }
  0xa4   : > { %539 = vmatprep.subr.mxu0 %v450_v48  ;;  %2613 = vmatprep.subr.mxu1 %v3100_v4 }
  0xa5   : > { %540 = vmatpush1.msra.mxu0 %v449_v49  ;;  %2614 = vmatpush3.msra.mxu1 %v451_v50 }
  0xa6   : > { %541 = vmatprep.subr.mxu0 %v447_v51  ;;  %2615 = vmatprep.subr.mxu1 %v3100_v4 }
  0xa7   : > { %542 = vmatpush1.msra.mxu0 %v446_v52  ;;  %2616 = vmatpush3.msra.mxu1 %v448_v53 }
  0xa8   : > { %2617 = vmatprep.mubr.msk.f32.mxu1 %vm3101_vm0, %v3100_v4  ;;  %2625 = vmatprep.subr.mxu1 %v3100_v4 }
  0xa9   : > { %2620 = vmatprep.subr.mxu0 %v3100_v4 }
 0x110   : > { %v421_v14 = vpop.xlane.xlu0 %420 }
 0x111   : > { %v423_v15 = vmul.f32 0.0078125, %v421_v14 }
 0x113   : > { %v3346_v16 = vsub.f32 %v3336_v0, %v423_v15 }
 0x115   : > { %v425_v17 = vmul.f32 %v3346_v16, %v3346_v16 }
 0x117   : > { %426 = vadd.xlane.f32.xlu0 %v425_v17 }
 0x1a0   : > { %v427_v54 = vpop.xlane.xlu0 %426 }
 0x1a1   : > { %v428_v55 = vmul.f32 0.0078125, %v427_v54 }
 0x1a3   : > { %v429_v56 = vadd.f32 1e-05, %v428_v55 }
 0x1a5   : > { %2812 = vrsqrt.f32 %v429_v56 }
 0x1b2   : > { %v2813_v57 = vpop.eup %2812 }
 0x1b3   : > { %v431_v59 = vmul.f32 %v2813_v57, %v3346_v16 }
 0x1b5   : > { %v438_v61 = vmul.f32 %v3365_v58, %v431_v59 }
 0x1b7   : > { %v445_v62 = vadd.f32 %v3368_v60, %v438_v61 }
 0x1b9   : > { %576 = vmatmul.mubr.f32.vlgmr.msra.gmra.mxu0 %v445_v62  ;;  %2618 = vmatmul.mubr.f32.vlgmr.msra.gmra.mxu1 %v445_v62 }
 0x1ba   : > { %2622 = vmatprep.mubr.msk.f32.mxu0 %vm3101_vm0, %v3100_v4  ;;  %2627 = vmatprep.mubr.msk.f32.mxu1 %vm3101_vm0, %v3100_v4 }
 0x279   : > { %v577_v10 = vpop.f32.mrf.mxu0  ;;  %v648_v11 = vpop.f32.mrf.mxu1 }
 0x27a   : > { %v578_v12 = vadd.f32 %v577_v10, %v499_v7  ;;  %v3388_v13 = vadd.f32 %v648_v11, %v507_v8 }
 0x27b   : > { %v579_v14 = vpop.f32.mrf.mxu0  ;;  %v2619_v15 = vpop.f32.mrf.mxu1 }
 0x27c   : > { %v580_v16 = vadd.f32 %v579_v14, %v503_v9  ;;  %2626 = vmatpush3.msra.mxu1 %v3388_v13  ;;  %826 = vrot.lane.b32.xlu1 %v578_v12, %s3102_s23 }
 0x27d   : > { %2635 = vmatprep.subr.mxu1 %v3100_v4 }
 0x27e   : > { %1007 = vrot.lane.b32.xlu0 %v580_v16, %s3103_s26  ;;  %2621 = vmatpush3.xpose.msk.msra.mxu0 %vm658_vm1, %v580_v16 }
 0x27f   : > { %2630 = vmatprep.subr.mxu0 %v3100_v4 }
 0x280   : > { %829 = vrot.lane.b32.xlu1 %v580_v16, %s3102_s23 }
 0x281   : > { %2623 = vmatmul.mubr.msk.f32.vlgmr.msra.gmra.mxu0 %vm658_vm1, %v578_v12 }
 0x282   : > { %1538 = vrot.lane.b32.xlu0 %v578_v12, %s3104_s18  ;;  %2632 = vmatprep.mubr.msk.f32.mxu0 %vm3101_vm0, %v3100_v4 }
 0x284   : > { %1004 = vrot.lane.b32.xlu1 %v578_v12, %s3103_s26 }
 0x286   : > { %1716 = vrot.lane.b32.xlu0 %v578_v12, %s3105_s27 }
 0x288   : > { %1182 = vrot.lane.b32.xlu1 %v578_v12, %s3106_s17 }
 0x28a   : > { %1894 = vrot.lane.b32.xlu0 %v578_v12, %s3107_s20 }
 0x28c   : > { %1360 = vrot.lane.b32.xlu1 %v578_v12, %s3108_s22 }
 0x290   : > { %1185 = vrot.lane.b32.xlu1 %v580_v16, %s3106_s17 }
 0x294   : > { %1363 = vrot.lane.b32.xlu1 %v580_v16, %s3108_s22 }
 0x298   : > { %1541 = vrot.lane.b32.xlu1 %v580_v16, %s3104_s18 }
 0x29c   : > { %1719 = vrot.lane.b32.xlu1 %v580_v16, %s3105_s27 }
 0x2a0   : > { %1897 = vrot.lane.b32.xlu1 %v580_v16, %s3107_s20 }
 0x2ee   : > { %v827_v17 = vpop.permute.xlu1 %826 }
 0x2f0   : > { %v1008_v19 = vpop.permute.xlu0 %1007 }
 0x2f2   : > { %v830_v18 = vpop.permute.xlu1 %829 }
 0x2f3   : > { %2631 = vmatpush3.xpose.msk.msra.mxu0 %vm658_vm1, %v830_v18 }
 0x2f4   : > { %2640 = vmatprep.subr.mxu0 %v3100_v4  ;;  %v1539_v25 = vpop.permute.xlu0 %1538 }
 0x2f6   : > { %v1005_v20 = vpop.permute.xlu1 %1004  ;;  %2633 = vmatmul.mubr.msk.f32.vlgmr.msra.gmra.mxu0 %vm658_vm1, %v827_v17 }
 0x2f7   : > { %2641 = vmatpush3.xpose.msk.msra.mxu0 %vm658_vm1, %v1008_v19  ;;  %2642 = vmatprep.mubr.msk.f32.mxu0 %vm3101_vm0, %v3100_v4 }
 0x2f8   : > { %2650 = vmatprep.subr.mxu0 %v3100_v4  ;;  %v1717_v28 = vpop.permute.xlu0 %1716 }
 0x2fa   : > { %v1183_v21 = vpop.permute.xlu1 %1182  ;;  %2643 = vmatmul.mubr.msk.f32.vlgmr.msra.gmra.mxu0 %vm658_vm1, %v1005_v20 }
 0x2fb   : > { %2652 = vmatprep.mubr.msk.f32.mxu0 %vm3101_vm0, %v3100_v4 }
 0x2fc   : > { %v1895_v30 = vpop.permute.xlu0 %1894 }
 0x2fe   : > { %v1361_v22 = vpop.permute.xlu1 %1360 }
 0x302   : > { %v1186_v23 = vpop.permute.xlu1 %1185 }
 0x303   : > { %2651 = vmatpush3.xpose.msk.msra.mxu0 %vm658_vm1, %v1186_v23 }
 0x304   : > { %2660 = vmatprep.subr.mxu0 %v3100_v4 }
 0x306   : > { %v1364_v24 = vpop.permute.xlu1 %1363  ;;  %2653 = vmatmul.mubr.msk.f32.vlgmr.msra.gmra.mxu0 %vm658_vm1, %v1183_v21 }
 0x307   : > { %2661 = vmatpush3.xpose.msk.msra.mxu0 %vm658_vm1, %v1364_v24  ;;  %2662 = vmatprep.mubr.msk.f32.mxu0 %vm3101_vm0, %v3100_v4 }
 0x308   : > { %2670 = vmatprep.subr.mxu0 %v3100_v4 }
 0x30a   : > { %v1542_v26 = vpop.permute.xlu1 %1541  ;;  %2663 = vmatmul.mubr.msk.f32.vlgmr.msra.gmra.mxu0 %vm658_vm1, %v1361_v22 }
 0x30b   : > { %2671 = vmatpush3.xpose.msk.msra.mxu0 %vm658_vm1, %v1542_v26  ;;  %2672 = vmatprep.mubr.msk.f32.mxu0 %vm3101_vm0, %v3100_v4 }
 0x30c   : > { %2680 = vmatprep.subr.mxu0 %v3100_v4 }
 0x30e   : > { %v1720_v27 = vpop.permute.xlu1 %1719  ;;  %2673 = vmatmul.mubr.msk.f32.vlgmr.msra.gmra.mxu0 %vm658_vm1, %v1539_v25 }
 0x30f   : > { %2681 = vmatpush3.xpose.msk.msra.mxu0 %vm658_vm1, %v1720_v27  ;;  %2682 = vmatprep.mubr.msk.f32.mxu0 %vm3101_vm0, %v3100_v4 }
 0x310   : > { %2690 = vmatprep.subr.mxu0 %v3100_v4 }
 0x312   : > { %v1898_v29 = vpop.permute.xlu1 %1897  ;;  %2683 = vmatmul.mubr.msk.f32.vlgmr.msra.gmra.mxu0 %vm658_vm1, %v1717_v28 }
 0x313   : > { %2691 = vmatpush3.xpose.msk.msra.mxu0 %vm658_vm1, %v1898_v29  ;;  %2692 = vmatprep.mubr.msk.f32.mxu0 %vm3101_vm0, %v3100_v4 }
 0x316   : > { %2693 = vmatmul.mubr.msk.f32.vlgmr.msra.gmra.mxu0 %vm658_vm1, %v1895_v30 }
 0x317   : > { %2192 = vmatprep.mubr.f32.mxu0 %v3100_v4 }
 0x341   : > { %v731_v31 = vpop.f32.mrf.mxu0 }
 0x342   : > { %v735_v32 = vmul.f32 0.25, %v731_v31 }
 0x343   : > { %v2624_v33 = vpop.f32.mrf.mxu0 }
 0x344   : > { %v737_v34 = vsel %vm736_vm2, %v735_v32, -inf }
 0x345   : > { %738 = vmax.xlane.f32.xlu1 %v737_v34 }
 0x3b6   : > { %v901_v35 = vpop.f32.mrf.mxu0 }
 0x3b7   : > { %v905_v36 = vmul.f32 0.25, %v901_v35 }
 0x3b8   : > { %v2634_v37 = vpop.f32.mrf.mxu0 }
 0x3b9   : > { %v906_v38 = vsel %vm736_vm2, %v905_v36, -inf }
 0x3ba   : > { %907 = vmax.xlane.f32.xlu0 %v906_v38  ;;  %v1079_v39 = vpop.f32.mrf.mxu0 }
 0x3bb   : > { %v1083_v40 = vmul.f32 0.25, %v1079_v39 }
 0x3bc   : > { %v2644_v41 = vpop.f32.mrf.mxu0 }
 0x3bd   : > { %v1084_v42 = vsel %vm736_vm2, %v1083_v40, -inf }
 0x3be   : > { %1085 = vmax.xlane.f32.xlu0 %v1084_v42 }
 0x3c6   : > { %v1257_v43 = vpop.f32.mrf.mxu0 }
 0x3c7   : > { %v1261_v44 = vmul.f32 0.25, %v1257_v43 }
 0x3c8   : > { %v2654_v45 = vpop.f32.mrf.mxu0 }
 0x3c9   : > { %v1262_v46 = vsel %vm736_vm2, %v1261_v44, -inf }
 0x3ca   : > { %1263 = vmax.xlane.f32.xlu1 %v1262_v46  ;;  %v1435_v47 = vpop.f32.mrf.mxu0 }
 0x3cb   : > { %v1439_v48 = vmul.f32 0.25, %v1435_v47 }
 0x3cc   : > { %v2664_v49 = vpop.f32.mrf.mxu0 }
 0x3cd   : > { %v1440_v50 = vsel %vm736_vm2, %v1439_v48, -inf }
 0x3ce   : > { %1441 = vmax.xlane.f32.xlu0 %v1440_v50  ;;  %v1613_v51 = vpop.f32.mrf.mxu0  ;;  %v739_v63 = vpop.xlane.xlu1 %738 }
 0x3cf   : > { %v1617_v52 = vmul.f32 0.25, %v1613_v51  ;;  %v740_v3 = vsub.f32 %v735_v32, %v739_v63 }
 0x3d0   : > { %v2674_v53 = vpop.f32.mrf.mxu0 }
 0x3d1   : > { %v1618_v54 = vsel %vm736_vm2, %v1617_v52, -inf  ;;  %v741_v5 = vmul.f32 1.442695, %v740_v3 }
 0x3d2   : > { %1619 = vmax.xlane.f32.xlu1 %v1618_v54  ;;  %v1791_v55 = vpop.f32.mrf.mxu0 }
 0x3d3   : > { %v1795_v56 = vmul.f32 0.25, %v1791_v55  ;;  %2814 = vpow2.f32 %v741_v5 }
 0x3d4   : > { %v2684_v57 = vpop.f32.mrf.mxu0 }
 0x3d5   : > { %v1796_v59 = vsel %vm736_vm2, %v1795_v56, -inf }
 0x3d6   : > { %1797 = vmax.xlane.f32.xlu0 %v1796_v59  ;;  %v1969_v61 = vpop.f32.mrf.mxu0 }
 0x3d7   : > { %v1973_v7 = vmul.f32 0.25, %v1969_v61 }
 0x3d8   : > { %v2694_v62 = vpop.f32.mrf.mxu0 }
 0x3d9   : > { %v1974_v8 = vsel %vm736_vm2, %v1973_v7, -inf }
 0x3e0   : > { %v2815_v9 = vpop.eup %2814 }
 0x3e1   : > { %v743_v10 = vsel %vm736_vm2, %v2815_v9, 0.0 }
 0x3e3   : > { %1096 = vrot.lane.b32.xlu1 %v3388_v13, %s3103_s26 }
 0x3ec   : > { %918 = vrot.lane.b32.xlu0 %v3388_v13, %s3102_s23 }
 0x407   : > { %1975 = vmax.xlane.f32.xlu1 %v1974_v8 }
 0x40b   : > { %744 = vadd.xlane.f32.xlu0 %v743_v10 }
 0x418   : > { %1274 = vrot.lane.b32.xlu1 %v3388_v13, %s3106_s17 }
 0x443   : > { %v908_v11 = vpop.xlane.xlu0 %907 }
 0x444   : > { %v909_v12 = vsub.f32 %v905_v36, %v908_v11 }
 0x446   : > { %v910_v14 = vmul.f32 1.442695, %v909_v12 }
 0x447   : > { %v1086_v15 = vpop.xlane.xlu0 %1085 }
 0x448   : > { %2816 = vpow2.f32 %v910_v14  ;;  %v1087_v16 = vsub.f32 %v1083_v40, %v1086_v15 }
 0x44a   : > { %v1088_v17 = vmul.f32 1.442695, %v1087_v16 }
 0x44c   : > { %2818 = vpow2.f32 %v1088_v17 }
 0x453   : > { %v1264_v22 = vpop.xlane.xlu1 %1263 }
 0x454   : > { %v1265_v23 = vsub.f32 %v1261_v44, %v1264_v22 }
 0x455   : > { %v2817_v18 = vpop.eup %2816 }
 0x456   : > { %v912_v19 = vsel %vm736_vm2, %v2817_v18, 0.0  ;;  %v1266_v27 = vmul.f32 1.442695, %v1265_v23 }
 0x457   : > { %913 = vadd.xlane.f32.xlu1 %v912_v19  ;;  %v1442_v24 = vpop.xlane.xlu0 %1441 }
 0x458   : > { %v1443_v26 = vsub.f32 %v1439_v48, %v1442_v24  ;;  %2820 = vpow2.f32 %v1266_v27 }
 0x459   : > { %v3460_v20 = vpop.eup %2818 }
 0x45a   : > { %v1090_v21 = vsel %vm736_vm2, %v3460_v20, 0.0  ;;  %v1444_v30 = vmul.f32 1.442695, %v1443_v26 }
 0x45b   : > { %1091 = vadd.xlane.f32.xlu0 %v1090_v21  ;;  %v1620_v25 = vpop.xlane.xlu1 %1619 }
 0x45c   : > { %v1621_v28 = vsub.f32 %v1617_v52, %v1620_v25  ;;  %2822 = vpow2.f32 %v1444_v30 }
 0x45e   : > { %v1622_v31 = vmul.f32 1.442695, %v1621_v28 }
 0x45f   : > { %v1798_v29 = vpop.xlane.xlu0 %1797  ;;  %v1097_v38 = vpop.permute.xlu1 %1096 }
 0x460   : > { %v1799_v32 = vsub.f32 %v1795_v56, %v1798_v29  ;;  %2824 = vpow2.f32 %v1622_v31 }
 0x462   : > { %v1800_v33 = vmul.f32 1.442695, %v1799_v32 }
 0x463   : > { %v919_v42 = vpop.permute.xlu0 %918 }
 0x464   : > { %2826 = vpow2.f32 %v1800_v33 }
 0x465   : > { %v2821_v34 = vpop.eup %2820 }
 0x466   : > { %v1268_v36 = vsel %vm736_vm2, %v2821_v34, 0.0 }
 0x468   : > { %1630 = vrot.lane.b32.xlu1 %v3388_v13, %s3104_s18 }
 0x469   : > { %v3468_v35 = vpop.eup %2822 }
 0x46a   : > { %v1446_v39 = vsel %vm736_vm2, %v3468_v35, 0.0 }
 0x46d   : > { %v3471_v37 = vpop.eup %2824 }
 0x46e   : > { %v1624_v40 = vsel %vm736_vm2, %v3471_v37, 0.0 }
 0x471   : > { %1452 = vrot.lane.b32.xlu0 %v3388_v13, %s3108_s22  ;;  %v3477_v41 = vpop.eup %2826 }
 0x472   : > { %v1802_v46 = vsel %vm736_vm2, %v3477_v41, 0.0 }
 0x48c   : > { %1269 = vadd.xlane.f32.xlu1 %v1268_v36 }
 0x490   : > { %1447 = vadd.xlane.f32.xlu0 %v1446_v39  ;;  %1625 = vadd.xlane.f32.xlu1 %v1624_v40  ;;  %v1976_v43 = vpop.xlane.xlu1 %1975 }
 0x491   : > { %v1977_v44 = vsub.f32 %v1973_v7, %v1976_v43 }
 0x493   : > { %v1978_v45 = vmul.f32 1.442695, %v1977_v44 }
 0x494   : > { %1803 = vadd.xlane.f32.xlu0 %v1802_v46  ;;  %v745_v47 = vpop.xlane.xlu0 %744  ;;  %v1275_v52 = vpop.permute.xlu1 %1274  ;;  %v2114_v46 = vld [vmem:[#allocation12 + $0xf0] sm:$0xff] }
 0x495   : > { %2828 = vpow2.f32 %v1978_v45  ;;  %v2115_v45 = vld [vmem:[#allocation12 + $0xf8] sm:$0xff] }
 0x496   : > { %2830 = vrcp.f32 %v745_v47  ;;  %v2113_v47 = vld [vmem:[#allocation12 + $0xe8] sm:$0xff]  ;;  %2128 = vmatprep.subr.mxu0 %v2115_v45  ;;  %v2216_v45 = vld [vmem:[#allocation13 + $0x38] sm:$0xff] }
 0x497   : > { %2129 = vmatpush1.msra.mxu0 %v2114_v46  ;;  %v2231_v46 = vld [vmem:[#allocation13 + $0xb0] sm:$0xff] }
 0x498   : > { %2130 = vmatprep.subr.mxu0 %v2113_v47  ;;  %v2215_v47 = vld [vmem:[#allocation13 + $0x30] sm:$0xff] }
 0x4a2   : > { %v3481_v48 = vpop.eup %2828 }
 0x4a3   : > { %v2831_v49 = vpop.eup %2830  ;;  %v1980_v50 = vsel %vm736_vm2, %v3481_v48, 0.0 }
 0x4a4   : > { %1981 = vadd.xlane.f32.xlu1 %v1980_v50  ;;  %v747_v51 = vmul.f32 %v2831_v49, %v2815_v9  ;;  %v2111_v49 = vld [vmem:[#allocation12 + $0xd8] sm:$0xff]  ;;  %v2110_v50 = vld [vmem:[#allocation12 + $0xd0] sm:$0xff] }
 0x4a6   : > { %2628 = vmatmul.mubr.msk.f32.vlgmr.msra.gmra.mxu1 %vm736_vm2, %v747_v51  ;;  %v2109_v51 = vld [vmem:[#allocation12 + $0xc8] sm:$0xff] }
 0x4a7   : > { %2636 = vmatpush3.msra.mxu1 %v919_v42  ;;  %2637 = vmatprep.mubr.msk.f32.mxu1 %vm3101_vm0, %v3100_v4 }
 0x4a8   : > { %2645 = vmatprep.subr.mxu1 %v3100_v4 }
 0x4aa   : > { %1808 = vrot.lane.b32.xlu0 %v3388_v13, %s3105_s27 }
 0x4b5   : > { %1986 = vrot.lane.b32.xlu1 %v3388_v13, %s3107_s20 }
 0x4e0   : > { %v914_v53 = vpop.xlane.xlu1 %913 }
 0x4e1   : > { %2832 = vrcp.f32 %v914_v53 }
 0x4e4   : > { %v1092_v54 = vpop.xlane.xlu0 %1091  ;;  %v1631_v13 = vpop.permute.xlu1 %1630 }
 0x4e5   : > { %2834 = vrcp.f32 %v1092_v54 }
 0x4e8   : > { %v1453_v61 = vpop.permute.xlu0 %1452 }
 0x4ee   : > { %v2833_v55 = vpop.eup %2832 }
 0x4ef   : > { %v916_v56 = vmul.f32 %v2833_v55, %v2817_v18 }
 0x4f1   : > { %2638 = vmatmul.mubr.msk.f32.vlgmr.msra.gmra.mxu1 %vm736_vm2, %v916_v56  ;;  %v2107_v56 = vld [vmem:[#allocation12 + $0xb8] sm:$0xff] }
 0x4f2   : > { %v2835_v57 = vpop.eup %2834  ;;  %2646 = vmatpush3.msra.mxu1 %v1097_v38  ;;  %2647 = vmatprep.mubr.msk.f32.mxu1 %vm3101_vm0, %v3100_v4 }
 0x4f3   : > { %2655 = vmatprep.subr.mxu1 %v3100_v4  ;;  %v1094_v59 = vmul.f32 %v2835_v57, %v3460_v20  ;;  %v2106_v57 = vld [vmem:[#allocation12 + $0xb0] sm:$0xff] }
 0x4f5   : > { %2648 = vmatmul.mubr.msk.f32.vlgmr.msra.gmra.mxu1 %vm736_vm2, %v1094_v59  ;;  %v2105_v59 = vld [vmem:[#allocation12 + $0xa8] sm:$0xff] }
 0x4f6   : > { %2656 = vmatpush3.msra.mxu1 %v1275_v52  ;;  %2657 = vmatprep.mubr.msk.f32.mxu1 %vm3101_vm0, %v3100_v4  ;;  %v2108_v52 = vld [vmem:[#allocation12 + $0xc0] sm:$0xff] }
 0x4f7   : > { %2665 = vmatprep.subr.mxu1 %v3100_v4 }
 0x515   : > { %v1270_v62 = vpop.xlane.xlu1 %1269 }
 0x516   : > { %2836 = vrcp.f32 %v1270_v62  ;;  %v2102_v62 = vld [vmem:[#allocation12 + $0x90] sm:$0xff] }
 0x519   : > { %v1448_v63 = vpop.xlane.xlu0 %1447  ;;  %v1626_v3 = vpop.xlane.xlu1 %1625 }
 0x51a   : > { %2838 = vrcp.f32 %v1448_v63  ;;  %v2101_v63 = vld [vmem:[#allocation12 + $0x88] sm:$0xff] }
 0x51b   : > { %2840 = vrcp.f32 %v1626_v3  ;;  %v2100_v3 = vld [vmem:[#allocation12 + $0x80] sm:$0xff] }
 0x51d   : > { %v1804_v5 = vpop.xlane.xlu0 %1803 }
 0x51e   : > { %2842 = vrcp.f32 %v1804_v5  ;;  %v2099_v5 = vld [vmem:[#allocation12 + $0x78] sm:$0xff] }
 0x521   : > { %v1809_v16 = vpop.permute.xlu0 %1808 }
 0x523   : > { %v2837_v7 = vpop.eup %2836 }
 0x524   : > { %v1272_v8 = vmul.f32 %v2837_v7, %v2821_v34  ;;  %v2098_v7 = vld [vmem:[#allocation12 + $0x70] sm:$0xff] }
 0x526   : > { %2658 = vmatmul.mubr.msk.f32.vlgmr.msra.gmra.mxu1 %vm736_vm2, %v1272_v8  ;;  %v2097_v8 = vld [vmem:[#allocation12 + $0x68] sm:$0xff] }
 0x527   : > { %v2839_v9 = vpop.eup %2838  ;;  %2666 = vmatpush3.msra.mxu1 %v1453_v61  ;;  %2667 = vmatprep.mubr.msk.f32.mxu1 %vm3101_vm0, %v3100_v4  ;;  %v2103_v61 = vld [vmem:[#allocation12 + $0x98] sm:$0xff] }
 0x528   : > { %2675 = vmatprep.subr.mxu1 %v3100_v4  ;;  %v1450_v10 = vmul.f32 %v2839_v9, %v3468_v35  ;;  %v2841_v11 = vpop.eup %2840  ;;  %v2096_v9 = vld [vmem:[#allocation12 + $0x60] sm:$0xff] }
 0x529   : > { %v1628_v12 = vmul.f32 %v2841_v11, %v3471_v37  ;;  %v2094_v11 = vld [vmem:[#allocation12 + $0x50] sm:$0xff] }
 0x52a   : > { %2668 = vmatmul.mubr.msk.f32.vlgmr.msra.gmra.mxu1 %vm736_vm2, %v1450_v10  ;;  %v2095_v10 = vld [vmem:[#allocation12 + $0x58] sm:$0xff] }
 0x52b   : > { %2676 = vmatpush3.msra.mxu1 %v1631_v13  ;;  %2677 = vmatprep.mubr.msk.f32.mxu1 %vm3101_vm0, %v3100_v4  ;;  %v2843_v14 = vpop.eup %2842  ;;  %v2104_v13 = vld [vmem:[#allocation12 + $0xa0] sm:$0xff] }
 0x52c   : > { %2685 = vmatprep.subr.mxu1 %v3100_v4  ;;  %v1806_v17 = vmul.f32 %v2843_v14, %v3477_v41  ;;  %v2092_v14 = vld [vmem:[#allocation12 + $0x40] sm:$0xff] }
 0x52d   : > { %v1982_v15 = vpop.xlane.xlu1 %1981 }
 0x52e   : > { %2844 = vrcp.f32 %v1982_v15  ;;  %2678 = vmatmul.mubr.msk.f32.vlgmr.msra.gmra.mxu1 %vm736_vm2, %v1628_v12  ;;  %v2093_v12 = vld [vmem:[#allocation12 + $0x48] sm:$0xff]  ;;  %v2091_v15 = vld [vmem:[#allocation12 + $0x38] sm:$0xff] }
 0x52f   : > { %2686 = vmatpush3.msra.mxu1 %v1809_v16  ;;  %2687 = vmatprep.mubr.msk.f32.mxu1 %vm3101_vm0, %v3100_v4  ;;  %v2090_v16 = vld [vmem:[#allocation12 + $0x30] sm:$0xff] }
 0x530   : > { %2695 = vmatprep.subr.mxu1 %v3100_v4 }
 0x531   : > { %v1987_v18 = vpop.permute.xlu1 %1986 }
 0x532   : > { %2688 = vmatmul.mubr.msk.f32.vlgmr.msra.gmra.mxu1 %vm736_vm2, %v1806_v17  ;;  %v2089_v17 = vld [vmem:[#allocation12 + $0x28] sm:$0xff] }
 0x533   : > { %2696 = vmatpush3.msra.mxu1 %v1987_v18  ;;  %2697 = vmatprep.mubr.msk.f32.mxu1 %vm3101_vm0, %v3100_v4  ;;  %v2088_v18 = vld [vmem:[#allocation12 + $0x20] sm:$0xff] }
 0x53b   : > { %v2845_v19 = vpop.eup %2844 }
 0x53c   : > { %v1984_v20 = vmul.f32 %v2845_v19, %v3481_v48  ;;  %v2112_v48 = vld [vmem:[#allocation12 + $0xe0] sm:$0xff]  ;;  %v2087_v19 = vld [vmem:[#allocation12 + $0x18] sm:$0xff] }
 0x53d   : > { %2131 = vmatpush1.msra.mxu0 %v2112_v48  ;;  %v2230_v48 = vld [vmem:[#allocation13 + $0xa8] sm:$0xff] }
 0x53e   : > { %2698 = vmatmul.mubr.msk.f32.vlgmr.msra.gmra.mxu1 %vm736_vm2, %v1984_v20  ;;  %2132 = vmatprep.subr.mxu0 %v2111_v49  ;;  %v2086_v20 = vld [vmem:[#allocation12 + $0x10] sm:$0xff]  ;;  %v2214_v49 = vld [vmem:[#allocation13 + $0x28] sm:$0xff] }
 0x53f   : > { %2133 = vmatpush1.msra.mxu0 %v2110_v50  ;;  %v2229_v50 = vld [vmem:[#allocation13 + $0xa0] sm:$0xff] }
 0x540   : > { %2134 = vmatprep.subr.mxu0 %v2109_v51  ;;  %v2213_v51 = vld [vmem:[#allocation13 + $0x20] sm:$0xff] }
 0x541   : > { %2135 = vmatpush1.msra.mxu0 %v2108_v52  ;;  %v2228_v52 = vld [vmem:[#allocation13 + $0x98] sm:$0xff] }
 0x542   : > { %2136 = vmatprep.subr.mxu0 %v2107_v56  ;;  %v2210_v56 = vld [vmem:[#allocation13 + $0x8] sm:$0xff] }
 0x543   : > { %2137 = vmatpush1.msra.mxu0 %v2106_v57  ;;  %v2225_v57 = vld [vmem:[#allocation13 + $0x80] sm:$0xff] }
 0x544   : > { %2138 = vmatprep.subr.mxu0 %v2105_v59  ;;  %v2209_v59 = vld [vmem:[#allocation13] sm:$0xff] }
 0x545   : > { %2139 = vmatpush1.msra.mxu0 %v2104_v13  ;;  %v2116_v13 = vld [vmem:[%s3596_s6] sm:$0x3] }
 0x546   : > { %2140 = vmatprep.subr.mxu0 %v2103_v61  ;;  %v2121_v61 = vrot.slane %v2116_v13, %v498_v2 }
 0x547   : > { %2141 = vmatpush1.msra.mxu0 %v2102_v62  ;;  %v2125_v62 = vrot.slane %v2116_v13, %v502_v6 }
 0x548   : > { %2142 = vmatprep.subr.mxu0 %v2101_v63 }
 0x549   : > { %2143 = vmatpush1.msra.mxu0 %v2100_v3 }
 0x54a   : > { %2144 = vmatprep.subr.mxu0 %v2099_v5 }
 0x54b   : > { %2145 = vmatpush1.msra.mxu0 %v2098_v7 }
 0x54c   : > { %2146 = vmatprep.subr.mxu0 %v2097_v8 }
 0x54d   : > { %2147 = vmatpush1.msra.mxu0 %v2096_v9 }
 0x54e   : > { %2148 = vmatprep.subr.mxu0 %v2095_v10 }
 0x54f   : > { %2149 = vmatpush1.msra.mxu0 %v2094_v11 }
 0x550   : > { %2150 = vmatprep.subr.mxu0 %v2093_v12 }
 0x551   : > { %2151 = vmatpush1.msra.mxu0 %v2092_v14 }
 0x552   : > { %2152 = vmatprep.subr.mxu0 %v2091_v15 }
 0x553   : > { %2153 = vmatpush1.msra.mxu0 %v2090_v16 }
 0x554   : > { %2154 = vmatprep.subr.mxu0 %v2089_v17  ;;  %v2496_v17 = vld [vmem:[%s3598_s8] ss:$0 sm:$0xff] }
 0x555   : > { %2155 = vmatpush1.msra.mxu0 %v2088_v18 }
 0x556   : > { %2156 = vmatprep.subr.mxu0 %v2087_v19 }
 0x557   : > { %2157 = vmatpush1.msra.mxu0 %v2086_v20 }
 0x566   : > { %v817_v21 = vpop.f32.mrf.mxu1 }
 0x567   : > { %821 = vst.msk [vmem:[#allocation3] sm:$0xff] %vm658_vm1, %v817_v21  ;;  %v2085_v21 = vld [vmem:[#allocation12 + $0x8] sm:$0xff] }
 0x568   : > { %v2629_v22 = vpop.f32.mrf.mxu1  ;;  %2158 = vmatprep.subr.mxu0 %v2085_v21 }
 0x569   : > { %v2084_v22 = vld [vmem:[#allocation12] sm:$0xff] }
 0x56a   : > { %2159 = vmatpush1.msra.mxu0 %v2084_v22 }
 0x5b1   : > { %v990_v23 = vpop.f32.mrf.mxu1 }
 0x5b2   : > { %995 = vrot.lane.b32.xlu0 %v990_v23, %s3107_s20  ;;  %v2240_v23 = vld [vmem:[#allocation13 + $0xf8] sm:$0xff]  ;;  %s3109_s20 = smov [#allocation15]  }
 0x5b3   : > { %v2639_v24 = vpop.f32.mrf.mxu1  ;;  %2550 = vmatprep.subr.mxu1 %v2240_v23  ;;  %s3014_s15 = sshll.u32 %s3109_s20, 4  ;;  %s3015_s15 = int_to_ptr.vmem [resolvable:$false] %s3014_s15 }
 0x5b4   : > { %v2224_v24 = vld [vmem:[#allocation13 + $0x78] sm:$0xff]  ;;  %s3016_s2 = scalar_lea.vmem %s3015_s15, 256  ;;  %p3017_p2 = scmp.lt.s32.totalorder %s2335_s19, %s3015_s15 }
 0x5b5   : > { %v1168_v25 = vpop.f32.mrf.mxu1  ;;  %2551 = vmatpush3.msra.mxu1 %v2224_v24 }
 0x5b6   : > { %1173 = vrot.lane.b32.xlu1 %v1168_v25, %s3105_s27  ;;  %v2239_v25 = vld [vmem:[#allocation13 + $0xf0] sm:$0xff]  ;;  %s2321_s27 = scalar_lea.sflag [#allocation6], %s3314_s1 }
 0x5b7   : > { %v2649_v26 = vpop.f32.mrf.mxu1  ;;  %2552 = vmatprep.subr.mxu1 %v2239_v25 }
 0x5b8   : > { %v2223_v26 = vld [vmem:[#allocation13 + $0x70] sm:$0xff] }
 0x5b9   : > { %2553 = vmatpush3.msra.mxu1 %v2223_v26 }
 0x5e6   : > { %v1346_v27 = vpop.f32.mrf.mxu1 }
 0x5e7   : > { %1351 = vrot.lane.b32.xlu0 %v1346_v27, %s3104_s18  ;;  %v2238_v27 = vld [vmem:[#allocation13 + $0xe8] sm:$0xff]  ;;  %s2332_s18 = scalar_lea.hbm %s3599_s9, %s2498_s5 }
 0x5e8   : > { %v2659_v4 = vpop.f32.mrf.mxu1  ;;  %2554 = vmatprep.subr.mxu1 %v2238_v27 }
 0x5e9   : > { %v2222_v4 = vld [vmem:[#allocation13 + $0x68] sm:$0xff] }
 0x5ea   : > { %v1524_v28 = vpop.f32.mrf.mxu1  ;;  %2555 = vmatpush3.msra.mxu1 %v2222_v4 }
 0x5eb   : > { %1529 = vrot.lane.b32.xlu1 %v1524_v28, %s3108_s22 }
 0x5ec   : > { %v2669_v29 = vpop.f32.mrf.mxu1 }
 0x5ee   : > { %v1702_v30 = vpop.f32.mrf.mxu1 }
 0x5ef   : > { %1707 = vrot.lane.b32.xlu0 %v1702_v30, %s3106_s17  ;;  %s3010_s17 = scalar_lea.vmem %s2335_s19, 128 }
 0x5f0   : > { %v2679_v31 = vpop.f32.mrf.mxu1  ;;  %p3011_p8 = scmp.ne.s32.totalorder %s2335_s19, %s3010_s17  ;;  %p3018_p9 = scmp.lt.s32.totalorder %s3016_s2, %s3010_s17 }
 0x5f2   : > { %v1880_v32 = vpop.f32.mrf.mxu1  ;;  %p3012_p13 = pnand %p3011_p8, %p3627_p10  ;;  %p3019_p11 = por %p3018_p9, %p3017_p2 }
 0x5f3   : > { %1885 = vrot.lane.b32.xlu1 %v1880_v32, %s3103_s26 }
 0x5f4   : > { %v2689_v33 = vpop.f32.mrf.mxu1  ;;  %p3013_p0 = pneg %p3012_p13 }
 0x5f6   : > { %p3020_p1 = pnand %p3019_p11, %p3013_p0 }
 0x5fe   : > { %v2058_v34 = vpop.f32.mrf.mxu1 }
 0x5ff   : > { %2063 = vrot.lane.b32.xlu0 %v2058_v34, %s3102_s23 }
 0x600   : > { %v2699_v35 = vpop.f32.mrf.mxu1 }
 0x601   : > { %v2237_v35 = vld [vmem:[#allocation13 + $0xe0] sm:$0xff] }
 0x602   : > { %2556 = vmatprep.subr.mxu1 %v2237_v35 }
 0x624   : > { %v996_v36 = vpop.permute.xlu0 %995 }
 0x625   : > { %999 = vst.msk [vmem:[#allocation3] sm:$0xff] %vm998_vm3, %v996_v36  ;;  %v2221_v36 = vld [vmem:[#allocation13 + $0x60] sm:$0xff] }
 0x626   : > { %2557 = vmatpush3.msra.mxu1 %v2221_v36 }
 0x628   : > { %v1174_v37 = vpop.permute.xlu1 %1173 }
 0x629   : > { %1177 = vst.msk [vmem:[#allocation3] sm:$0xff] %vm1176_vm4, %v1174_v37  ;;  %v2236_v37 = vld [vmem:[#allocation13 + $0xd8] sm:$0xff] }
 0x62a   : > { %2558 = vmatprep.subr.mxu1 %v2236_v37 }
 0x659   : > { %v1352_v38 = vpop.permute.xlu0 %1351 }
 0x65a   : > { %1355 = vst.msk [vmem:[#allocation3] sm:$0xff] %vm1354_vm5, %v1352_v38  ;;  %v2220_v38 = vld [vmem:[#allocation13 + $0x58] sm:$0xff] }
 0x65b   : > { %2559 = vmatpush3.msra.mxu1 %v2220_v38 }
 0x65d   : > { %v1530_v39 = vpop.permute.xlu1 %1529 }
 0x65e   : > { %1533 = vst.msk [vmem:[#allocation3] sm:$0xff] %vm1532_vm6, %v1530_v39  ;;  %v2235_v39 = vld [vmem:[#allocation13 + $0xd0] sm:$0xff] }
 0x65f   : > { %2560 = vmatprep.subr.mxu1 %v2235_v39 }
 0x661   : > { %v1708_v40 = vpop.permute.xlu0 %1707 }
 0x662   : > { %1711 = vst.msk [vmem:[#allocation3] sm:$0xff] %vm1710_vm7, %v1708_v40  ;;  %v2219_v40 = vld [vmem:[#allocation13 + $0x50] sm:$0xff] }
 0x663   : > { %2561 = vmatpush3.msra.mxu1 %v2219_v40 }
 0x665   : > { %v1886_v41 = vpop.permute.xlu1 %1885 }
 0x666   : > { %1889 = vst.msk [vmem:[#allocation3] sm:$0xff] %vm1888_vm8, %v1886_v41  ;;  %v2234_v41 = vld [vmem:[#allocation13 + $0xc8] sm:$0xff] }
 0x667   : > { %2562 = vmatprep.subr.mxu1 %v2234_v41 }
 0x671   : > { %v2064_v42 = vpop.permute.xlu0 %2063 }
 0x672   : > { %2067 = vst.msk [vmem:[#allocation3] sm:$0xff] %vm2066_vm9, %v2064_v42  ;;  %v2218_v42 = vld [vmem:[#allocation13 + $0x48] sm:$0xff] }
 0x673   : > { %2563 = vmatpush3.msra.mxu1 %v2218_v42 }
 0x679   : > { %v2068_v43 = vld [vmem:[#allocation3] sm:$0xff] }
 0x67a   : > { %v3531_v44 = vadd.f32 %v2068_v43, %v3336_v0  ;;  %v2232_v43 = vld [vmem:[#allocation13 + $0xb8] sm:$0xff] }
 0x67c   : > { %2071 = vadd.xlane.f32.xlu1 %v3531_v44 }
 0x705   : > { %v2072_v0 = vpop.xlane.xlu1 %2071 }
 0x706   : > { %v2073_v53 = vmul.f32 0.0078125, %v2072_v0  ;;  %v2212_v0 = vld [vmem:[#allocation13 + $0x18] sm:$0xff] }
 0x708   : > { %v3535_v54 = vsub.f32 %v3531_v44, %v2073_v53  ;;  %v2227_v53 = vld [vmem:[#allocation13 + $0x90] sm:$0xff] }
 0x70a   : > { %v2075_v55 = vmul.f32 %v3535_v54, %v3535_v54 }
 0x70c   : > { %2076 = vadd.xlane.f32.xlu0 %v2075_v55  ;;  %v2226_v55 = vld [vmem:[#allocation13 + $0x88] sm:$0xff] }
 0x795   : > { %v2077_v28 = vpop.xlane.xlu0 %2076 }
 0x796   : > { %v2078_v29 = vmul.f32 0.0078125, %v2077_v28 }
 0x798   : > { %v2079_v30 = vadd.f32 1e-05, %v2078_v29 }
 0x79a   : > { %2846 = vrsqrt.f32 %v2079_v30 }
 0x7a7   : > { %v2847_v31 = vpop.eup %2846 }
 0x7a8   : > { %v2081_v32 = vmul.f32 %v2847_v31, %v3535_v54  ;;  %v2211_v54 = vld [vmem:[#allocation13 + $0x10] sm:$0xff] }
 0x7aa   : > { %v2082_v33 = vmul.f32 %v3365_v58, %v2081_v32  ;;  %v2233_v58 = vld [vmem:[#allocation13 + $0xc0] sm:$0xff] }
 0x7ab   : > { %2564 = vmatprep.subr.mxu1 %v2233_v58 }
 0x7ac   : > { %v2083_v34 = vadd.f32 %v3368_v60, %v2082_v33  ;;  %v2217_v60 = vld [vmem:[#allocation13 + $0x40] sm:$0xff] }
 0x7ad   : > { %2565 = vmatpush3.msra.mxu1 %v2217_v60 }
 0x7ae   : > { %2193 = vmatmul.mubr.f32.vlgmr.msra.gmra.mxu0 %v2083_v34  ;;  %2566 = vmatprep.subr.mxu1 %v2232_v43 }
 0x7af   : > { %2567 = vmatpush3.msra.mxu1 %v2216_v45 }
 0x7b0   : > { %2568 = vmatprep.subr.mxu1 %v2231_v46 }
 0x7b1   : > { %2569 = vmatpush3.msra.mxu1 %v2215_v47 }
 0x7b2   : > { %2570 = vmatprep.subr.mxu1 %v2230_v48 }
 0x7b3   : > { %2571 = vmatpush3.msra.mxu1 %v2214_v49 }
 0x7b4   : > { %2572 = vmatprep.subr.mxu1 %v2229_v50 }
 0x7b5   : > { %2573 = vmatpush3.msra.mxu1 %v2213_v51 }
 0x7b6   : > { %2574 = vmatprep.subr.mxu1 %v2228_v52 }
 0x7b7   : > { %2575 = vmatpush3.msra.mxu1 %v2212_v0 }
 0x7b8   : > { %2576 = vmatprep.subr.mxu1 %v2227_v53 }
 0x7b9   : > { %2577 = vmatpush3.msra.mxu1 %v2211_v54 }
 0x7ba   : > { %2578 = vmatprep.subr.mxu1 %v2226_v55 }
 0x7bb   : > { %2579 = vmatpush3.msra.mxu1 %v2210_v56 }
 0x7bc   : > { %2580 = vmatprep.subr.mxu1 %v2225_v57 }
 0x7bd   : > { %2581 = vmatpush3.msra.mxu1 %v2209_v59 }
 0x86e   : > { %v2194_v63 = vpop.f32.mrf.mxu0 }
 0x86f   : > { %v2195_v3 = vadd.f32 %v2194_v63, %v2121_v61 }
 0x870   : > { %v2196_v5 = vpop.f32.mrf.mxu0 }
 0x871   : > { %v2201_v7 = vmul.f32 0.70710677, %v2195_v3  ;;  %v2197_v8 = vadd.f32 %v2196_v5, %v2125_v62  ;;  %v2199_v16 = vmul.f32 0.5, %v2195_v3 }
 0x873   : > { %2848 = verf.f32 %v2201_v7  ;;  %v2202_v9 = vmul.f32 0.70710677, %v2197_v8  ;;  %v2200_v14 = vmul.f32 0.5, %v2197_v8 }
 0x875   : > { %2850 = verf.f32 %v2202_v9 }
 0x880   : > { %v2849_v10 = vpop.eup %2848 }
 0x881   : > { %v2205_v12 = vadd.f32 1.0, %v2849_v10 }
 0x882   : > { %v2851_v11 = vpop.eup %2850 }
 0x883   : > { %v2206_v15 = vadd.f32 1.0, %v2851_v11  ;;  %v2207_v1 = vmul.f32 %v2205_v12, %v2199_v16 }
 0x885   : > { %v2208_v2 = vmul.f32 %v2206_v15, %v2200_v14 }
 0x887   : > { %2312 = vmatprep.mubr.f32.mxu1 %v2208_v2 }
 0x888   : > { %2313 = vmatmul.mubr.f32.vlgmr.msra.gmra.mxu1 %v2207_v1 }
 0x948   : > { %v2582_v6 = vpop.f32.mrf.mxu1 }
 0x94a   : > { %v2583_v18 = vpop.f32.mrf.mxu1 }
 0x94b   : > { %v2584_v19 = vadd.f32 %v2583_v18, %v2582_v6 }
 0x94d   : > { %v2315_v20 = vadd.f32 %v2584_v19, %v2496_v17 }
 0x94f   : > { %v2318_v21 = vadd.f32 %v2315_v20, %v3531_v44 }
 0x951   : > { %2319 = vst [vmem:[%s416_s16] sm:$0xff] %v2318_v21 }
 0x952   : > { %3023 = shalt.err (!%p3020_p1)
}
 0x953   : > { %s3024_s22 = scalar_lea.hbm %s2332_s18, 128  ;;  %s3028_s24 = scalar_lea.hbm %s3599_s9, 256 }
 0x954   : > { %p3025_p3 = scmp.ne.s32.totalorder %s2332_s18, %s3024_s22  ;;  %p3029_p6 = scmp.lt.s32.totalorder %s2332_s18, %s3599_s9 }
 0x955   : > { %p3030_p5 = scmp.lt.s32.totalorder %s3028_s24, %s3024_s22 }
 0x956   : > { %p3026_p4 = pnand %p3025_p3, %p3627_p10 }
 0x957   : > { %p3031_p7 = por %p3030_p5, %p3029_p6 }
 0x958   : > { %p3027_p12 = pneg %p3026_p4 }
 0x95a   : > { %p3032_p8 = pnand %p3031_p7, %p3027_p12 }
 0x95c   : > { %3035 = shalt.err (!%p3032_p8)
}
 0x95d   : > { %2722 = dma.vmem_to_hbm [thread:$0]  (%p3627_p10), %s2335_s19, 128, %s2332_s18, %s2321_s27  }
 0x95e PF: > { %s2346_s5 = sand.u32 1, %s3074_s30   ;;  %p3628_p13 = scmp.ne.s32.totalorder %s3617_s13, 0 }
 0x95f   : > { %p3629_p0 = scmp.ge.s32.totalorder %s3086_s12, 2  ;;  %s2347_s16 = scalar_lea.sflag [#allocation6], %s2346_s5 }
 0x961   : > { %p2745_p2 = pnand %p3629_p0, %p3628_p13 }
 0x963   : > { %p2746_p9 = pneg %p2745_p2 }
 0x965   : > { %3069 = dma.done.wait (%p2746_p9), %s2347_s16, 128  }
 0x966   : > { %3071 = vsyncadd (%p2746_p9), %s2347_s16, 4294967168  ;;  %p25_p11 = scmp.ge.s32.totalorder %s3257_s25, 4   ;;  %s3630_s30 = smov %s3078_s10 }
 0x967   : > { %s3631_s10 = smov %s3082_s11  ;;  %s3632_s11 = smov %s3269_s28 }
 0x968   : > { %s3633_s12 = smov %s3257_s25  ;;  %27 = sbr.rel (!%p25_p11) target bundleno = 13 (0xd), region = 121 }
 0x96d   :  { %2352 = vsyncpa [#allocation5], 1 }
 0x96e   :  { %2354 = vsyncpa [#allocation5 + $0x1], 1 }
 0x96f   :  { %2355 = vsyncpa [#allocation8], 1 }
 0x970   :  { %2356 = vsyncpa [#allocation11], 1 }
 0x971   :  { %2357 = vsyncpa [#allocation14], 1 }
 0x972   :  { %2358 = vsyncpa [#allocation6], 1 }
 0x973   :  { %2360 = vsyncpa [#allocation6 + $0x1], 1 }

</bundles_post_ra>
